<compile_context>
chip_gen: v6e
topology: v6e:2x2x1
jax: 0.10.0
libtpu: 0.0.40
codegen_flags: <defaults>
</compile_context>

<pallas_src>
import jax
import jax.numpy as jnp
from jax import lax
from jax.experimental import pallas as pl
from jax.experimental.pallas import tpu as pltpu

jax.config.update("jax_default_matmul_precision", "float32")

# ----------------------- configuration (implied by SSM.__init__) ----------------
DIM = 32
HIDDEN_ARG = 48          # int(2*48/3)=32 -> multiple_of=8 -> hidden_dim = 32
MULTIPLE_OF = 8
STATE_DIM = 8
N_HEADS = 4
N_GROUPS = 1
CONV_SIZE = 4
BSZ = 2
SEQ = 8

HIDDEN = MULTIPLE_OF * ((int(2 * HIDDEN_ARG / 3) + MULTIPLE_OF - 1) // MULTIPLE_OF)  # 32
HEAD_DIM = HIDDEN // N_HEADS                                                          # 8
CONV_DIM = HIDDEN + 2 * N_GROUPS * STATE_DIM                                          # 48
D_IN_PROJ = 2 * HIDDEN + 2 * N_GROUPS * STATE_DIM + N_HEADS                           # 84
EPS = 1e-5


# ----------------------------- in-kernel helpers ---------------------------------
def _softplus(u):
    return jnp.where(u > 20.0, u, jnp.log1p(jnp.exp(jnp.minimum(u, 20.0))))


def _causal_conv_silu(xv, wv):
    """Depthwise causal conv1d along the (sublane) time axis, then SiLU.

    xv: (T, C) value, wv: (K, C) value.
    out[t, c] = silu( sum_k w[k, c] * x[t - K + 1 + k, c] ),  x[<0] = 0.
    """
    t_len, c = xv.shape
    k_size = wv.shape[0]
    acc = xv * wv[k_size - 1:k_size, :]          # k = K-1 (no shift)
    for k in range(k_size - 1):                  # static unroll, K in [2, 3, 4]
        shift = k_size - 1 - k
        shifted = jnp.concatenate(
            [jnp.zeros((shift, c), xv.dtype), xv[:t_len - shift, :]], axis=0)
        acc = acc + shifted * wv[k:k + 1, :]
    return acc * jax.nn.sigmoid(acc)


# ----------------------------- fused forward kernel ------------------------------
def _fused_ssm_kernel(x_ref, wz_ref, wx_ref, wb_ref, wc_ref, wdt_ref,
                      cwx_ref, cwb_ref, cwc_ref,
                      a_ref, dtb_ref, d_ref, nw_ref, wout_ref, o_ref):
    # x_ref: (T, DIM).  Weights are pre-split / pre-transposed / head-broadcast.
    x = x_ref[...]
    t_len = x.shape[0]

    # ---- in_proj (z, x-part of xBC, B, C, dt-per-head repeated to head_dim) ----
    z = jnp.dot(x, wz_ref[...], preferred_element_type=jnp.float32)     # (T, HIDDEN)
    xc = jnp.dot(x, wx_ref[...], preferred_element_type=jnp.float32)    # (T, H*P)
    bl = jnp.dot(x, wb_ref[...], preferred_element_type=jnp.float32)    # (T, N)
    cl = jnp.dot(x, wc_ref[...], preferred_element_type=jnp.float32)    # (T, N)
    dt = jnp.dot(x, wdt_ref[...], preferred_element_type=jnp.float32)   # (T, H*P)

    # ---- causal depthwise conv1d + SiLU (channel groups split -> exact) --------
    x_ssm = _causal_conv_silu(xc, cwx_ref[...])      # (T, H*P), lane = h*P + p
    b_all = _causal_conv_silu(bl, cwb_ref[...])      # (T, N), shared by heads (G=1)
    c_all = _causal_conv_silu(cl, cwc_ref[...])      # (T, N)
    # TODO(synk): n_groups > 1 would need per-group B/C handling here.

    # ---- selective scan (single-chunk "chunk scan" formulation) ----------------
    dtv = _softplus(dt + dtb_ref[...])               # (T, H*P), dt_softplus=True
    dta = dtv * a_ref[...]                           # dt * A  (A = -exp(A_log))
    dx = dtv * x_ssm                                 # (T, H*P)

    # cumulative sum of dt*A along time (fully unrolled, T static)
    rows = []
    run = jnp.zeros((1, dta.shape[1]), jnp.float32)
    for t in range(t_len):
        run = run + dta[t:t + 1, :]
        rows.append(run)
    cum = jnp.concatenate(rows, axis=0)              # (T, H*P)

    # y[t, hp] = sum_{s<=t} exp(cum[t]-cum[s]) * (C[t]·B[s]) * dt[s]*x[s] + D*x[t]
    y_rows = []
    for t in range(t_len):
        diff = cum[t:t + 1, :] - cum                               # (T_s, H*P)
        s_idx = lax.broadcasted_iota(jnp.int32, diff.shape, 0)
        decay = jnp.exp(jnp.where(s_idx <= t, diff, -1e30))        # masked pre-exp
        g_col = jnp.sum(b_all * c_all[t:t + 1, :], axis=1, keepdims=True)  # (T_s, 1)
        y_rows.append(jnp.sum(decay * g_col * dx, axis=0, keepdims=True))  # (1, H*P)
    y = jnp.concatenate(y_rows, axis=0) + d_ref[...] * x_ssm       # (T, H*P)

    # ---- gated RMSNorm + out_proj ----------------------------------------------
    g = y * (z * jax.nn.sigmoid(z))                  # y * silu(z)
    var = jnp.mean(g * g, axis=-1, keepdims=True)
    yn = g * lax.rsqrt(var + EPS) * nw_ref[...]
    o_ref[...] = jnp.dot(yn, wout_ref[...],
                         preferred_element_type=jnp.float32).astype(o_ref.dtype)


# ----------------------------- host-side wrappers ---------------------------------
def prepare_ssm_params(params):
    """One-time weight preprocessing (splits, transposes, head-dim broadcasts)."""
    w_in = params["w_in"]                                     # (D_IN_PROJ, DIM)
    n_bc = N_GROUPS * STATE_DIM
    w_z_t = w_in[:HIDDEN, :].T                                # (DIM, HIDDEN)
    w_x_t = w_in[HIDDEN:2 * HIDDEN, :].T                      # (DIM, HIDDEN)
    w_b_t = w_in[2 * HIDDEN:2 * HIDDEN + n_bc, :].T           # (DIM, N)
    w_c_t = w_in[2 * HIDDEN + n_bc:HIDDEN + CONV_DIM, :].T    # (DIM, N)
    w_dt_t = jnp.repeat(w_in[HIDDEN + CONV_DIM:, :], HEAD_DIM, axis=0).T  # (DIM, H*P)

    conv_w = params["conv_w"]                                 # (CONV_DIM, K)
    cw_x = conv_w[:HIDDEN, :].T                               # (K, HIDDEN)
    cw_b = conv_w[HIDDEN:HIDDEN + n_bc, :].T                  # (K, N)
    cw_c = conv_w[HIDDEN + n_bc:, :].T                        # (K, N)

    a_rep = jnp.repeat(-jnp.exp(params["a_log"]), HEAD_DIM)[None, :]      # (1, H*P)
    dtb_rep = jnp.repeat(params["dt_bias"], HEAD_DIM)[None, :]            # (1, H*P)
    d_rep = jnp.repeat(params["d"], HEAD_DIM)[None, :]                    # (1, H*P)
    norm_w = params["norm_w"][None, :]                                    # (1, HIDDEN)
    w_out_t = params["w_out"].T                                           # (HIDDEN, DIM)

    return (w_z_t, w_x_t, w_b_t, w_c_t, w_dt_t, cw_x, cw_b, cw_c,
            a_rep, dtb_rep, d_rep, norm_w, w_out_t)


def ssm_forward(x, prepped):
    bsz, seq, _ = x.shape

    def _w_spec(arr):
        nd = arr.ndim
        return pl.BlockSpec(arr.shape, lambda b, _nd=nd: (0,) * _nd)

    return pl.pallas_call(
        _fused_ssm_kernel,
        grid=(bsz,),
        out_shape=jax.ShapeDtypeStruct((bsz, seq, DIM), jnp.float32),
        in_specs=[pl.BlockSpec((None, seq, DIM), lambda b: (b, 0, 0))]
                 + [_w_spec(w) for w in prepped],
        out_specs=pl.BlockSpec((None, seq, DIM), lambda b: (b, 0, 0)),
        compiler_params=pltpu.CompilerParams(dimension_semantics=("parallel",)),
    )(x, *prepped)


# ----------------------------- pure-JAX reference ---------------------------------
def ref_forward(x, params):
    bsz, seq, _ = x.shape
    zxbcdt = x @ params["w_in"].T
    z = zxbcdt[..., :HIDDEN]
    xbc = zxbcdt[..., HIDDEN:HIDDEN + CONV_DIM]
    dt = zxbcdt[..., HIDDEN + CONV_DIM:]

    k = CONV_SIZE
    xpad = jnp.pad(xbc, ((0, 0), (k - 1, 0), (0, 0)))
    conv = sum(xpad[:, i:i + seq, :] * params["conv_w"][:, i] for i in range(k))
    xbc = conv * jax.nn.sigmoid(conv)

    x_ssm = xbc[..., :HIDDEN].reshape(bsz, seq, N_HEADS, HEAD_DIM)
    b_mat = xbc[..., HIDDEN:HIDDEN + N_GROUPS * STATE_DIM].reshape(bsz, seq, N_GROUPS, STATE_DIM)
    c_mat = xbc[..., HIDDEN + N_GROUPS * STATE_DIM:].reshape(bsz, seq, N_GROUPS, STATE_DIM)

    a = -jnp.exp(params["a_log"])
    dtv = _softplus(dt + params["dt_bias"])
    hpg = N_HEADS // N_GROUPS
    b_h = jnp.repeat(b_mat, hpg, axis=2)
    c_h = jnp.repeat(c_mat, hpg, axis=2)

    def step(state, inp):
        xt, dtt, bt, ct = inp
        da = jnp.exp(dtt * a)[..., None, None]
        new_state = da * state + (dtt[..., None] * xt)[..., None] * bt[:, :, None, :]
        yt = jnp.einsum("bhpn,bhn->bhp", new_state, ct) + params["d"][None, :, None] * xt
        return new_state, yt

    state0 = jnp.zeros((bsz, N_HEADS, HEAD_DIM, STATE_DIM), jnp.float32)
    _, ys = lax.scan(step, state0,
                     (x_ssm.transpose(1, 0, 2, 3), dtv.transpose(1, 0, 2),
                      b_h.transpose(1, 0, 2, 3), c_h.transpose(1, 0, 2, 3)))
    y = ys.transpose(1, 0, 2, 3).reshape(bsz, seq, HIDDEN)

    u = y * (z * jax.nn.sigmoid(z))
    var = jnp.mean(u * u, axis=-1, keepdims=True)
    yn = u * lax.rsqrt(var + EPS) * params["norm_w"]
    return yn @ params["w_out"].T


# ----------------------------- main ------------------------------------------------
if __name__ == "__main__":
    key = jax.random.PRNGKey(0)
    kx, k1, k2, k3, k4, k5 = jax.random.split(key, 6)

    in_std = DIM ** -0.5
    out_std = HIDDEN ** -0.5
    conv_std = CONV_SIZE ** -0.5

    dt_bias = jax.random.uniform(k4, (N_HEADS,), jnp.float32, 0.001, 0.1)
    dt_bias = jnp.clip(dt_bias, 1e-4, None)
    dt_bias = dt_bias + jnp.log(-jnp.expm1(-dt_bias))

    params = {
        "w_in": jnp.clip(jax.random.normal(k1, (D_IN_PROJ, DIM), jnp.float32) * in_std,
                         -3 * in_std, 3 * in_std),
        "w_out": jnp.clip(jax.random.normal(k2, (DIM, HIDDEN), jnp.float32) * out_std,
                          -3 * out_std, 3 * out_std),
        "conv_w": jnp.clip(jax.random.normal(k3, (CONV_DIM, CONV_SIZE), jnp.float32) * conv_std,
                           -3 * conv_std, 3 * conv_std),
        "dt_bias": dt_bias,
        "a_log": jnp.log(jax.random.uniform(k5, (N_HEADS,), jnp.float32, 1.0, 16.0)),
        "d": jnp.ones((N_HEADS,), jnp.float32),            # D_has_head_dim=False
        "norm_w": jnp.ones((HIDDEN,), jnp.float32),
    }

    x = jax.random.normal(kx, (BSZ, SEQ, DIM), jnp.float32)

    prepped = jax.block_until_ready(prepare_ssm_params(params))   # one-time prep
    out = jax.block_until_ready(ssm_forward(x, prepped))
    ref = jax.block_until_ready(ref_forward(x, params))

    assert out.shape == (BSZ, SEQ, DIM)
    assert jnp.allclose(out, ref, rtol=1e-3, atol=1e-3), float(jnp.max(jnp.abs(out - ref)))
    print("KERNEL_OK")
</pallas_src>

<mosaic_0001>
module attributes {stable_mosaic.version = 11 : i64} {
  func.func @_fused_ssm_kernel(%arg0: i32, %arg1: memref<1x8x32xf32, #tpu.memory_space<vmem>>, %arg2: memref<32x32xf32, #tpu.memory_space<vmem>>, %arg3: memref<32x32xf32, #tpu.memory_space<vmem>>, %arg4: memref<32x8xf32, #tpu.memory_space<vmem>>, %arg5: memref<32x8xf32, #tpu.memory_space<vmem>>, %arg6: memref<32x32xf32, #tpu.memory_space<vmem>>, %arg7: memref<4x32xf32, #tpu.memory_space<vmem>>, %arg8: memref<4x8xf32, #tpu.memory_space<vmem>>, %arg9: memref<4x8xf32, #tpu.memory_space<vmem>>, %arg10: memref<1x32xf32, #tpu.memory_space<vmem>>, %arg11: memref<1x32xf32, #tpu.memory_space<vmem>>, %arg12: memref<1x32xf32, #tpu.memory_space<vmem>>, %arg13: memref<1x32xf32, #tpu.memory_space<vmem>>, %arg14: memref<32x32xf32, #tpu.memory_space<vmem>>, %arg15: memref<1x8x32xf32, #tpu.memory_space<vmem>>) attributes {dimension_semantics = [#tpu.dimension_semantics<parallel>], iteration_bounds = array<i64: 2>, scalar_prefetch = 0 : i64, scratch_operands = 0 : i64, tpu.core_type = #tpu.core_type<tc>, window_params = [{transform_indices = @transform_0, window_bounds = array<i64: 1, 8, 32>}, {pipeline_mode = #tpu.pipeline_mode<synchronous>, transform_indices = @transform_1, window_bounds = array<i64: 32, 32>}, {pipeline_mode = #tpu.pipeline_mode<synchronous>, transform_indices = @transform_2, window_bounds = array<i64: 32, 32>}, {pipeline_mode = #tpu.pipeline_mode<synchronous>, transform_indices = @transform_3, window_bounds = array<i64: 32, 8>}, {pipeline_mode = #tpu.pipeline_mode<synchronous>, transform_indices = @transform_4, window_bounds = array<i64: 32, 8>}, {pipeline_mode = #tpu.pipeline_mode<synchronous>, transform_indices = @transform_5, window_bounds = array<i64: 32, 32>}, {pipeline_mode = #tpu.pipeline_mode<synchronous>, transform_indices = @transform_6, window_bounds = array<i64: 4, 32>}, {pipeline_mode = #tpu.pipeline_mode<synchronous>, transform_indices = @transform_7, window_bounds = array<i64: 4, 8>}, {pipeline_mode = #tpu.pipeline_mode<synchronous>, transform_indices = @transform_8, window_bounds = array<i64: 4, 8>}, {pipeline_mode = #tpu.pipeline_mode<synchronous>, transform_indices = @transform_9, window_bounds = array<i64: 1, 32>}, {pipeline_mode = #tpu.pipeline_mode<synchronous>, transform_indices = @transform_10, window_bounds = array<i64: 1, 32>}, {pipeline_mode = #tpu.pipeline_mode<synchronous>, transform_indices = @transform_11, window_bounds = array<i64: 1, 32>}, {pipeline_mode = #tpu.pipeline_mode<synchronous>, transform_indices = @transform_12, window_bounds = array<i64: 1, 32>}, {pipeline_mode = #tpu.pipeline_mode<synchronous>, transform_indices = @transform_13, window_bounds = array<i64: 32, 32>}, {transform_indices = @transform_14, window_bounds = array<i64: 1, 8, 32>}]} {
    %c0 = arith.constant 0 : index
    %c0_0 = arith.constant 0 : index
    %c0_1 = arith.constant 0 : index
    %0 = vector.load %arg1[%c0, %c0_0, %c0_1] : memref<1x8x32xf32, #tpu.memory_space<vmem>>, vector<1x8x32xf32>
    %1 = vector.shape_cast %0 : vector<1x8x32xf32> to vector<8x32xf32>
    %c0_2 = arith.constant 0 : index
    %c0_3 = arith.constant 0 : index
    %2 = vector.load %arg2[%c0_2, %c0_3] : memref<32x32xf32, #tpu.memory_space<vmem>>, vector<32x32xf32>
    %cst = arith.constant dense<0.000000e+00> : vector<8x32xf32>
    %3 = tpu.matmul %1, %2, %cst {dimension_numbers = #tpu.dot_dimension_numbers<[1], [0], [0], [1], [0, 0, 1, 1], [], []>, precision = #tpu.contract_precision<fp32>} : vector<8x32xf32>, vector<32x32xf32>, vector<8x32xf32> -> vector<8x32xf32>
    %c0_4 = arith.constant 0 : index
    %c0_5 = arith.constant 0 : index
    %4 = vector.load %arg3[%c0_4, %c0_5] : memref<32x32xf32, #tpu.memory_space<vmem>>, vector<32x32xf32>
    %cst_6 = arith.constant dense<0.000000e+00> : vector<8x32xf32>
    %5 = tpu.matmul %1, %4, %cst_6 {dimension_numbers = #tpu.dot_dimension_numbers<[1], [0], [0], [1], [0, 0, 1, 1], [], []>, precision = #tpu.contract_precision<fp32>} : vector<8x32xf32>, vector<32x32xf32>, vector<8x32xf32> -> vector<8x32xf32>
    %c0_7 = arith.constant 0 : index
    %c0_8 = arith.constant 0 : index
    %6 = vector.load %arg4[%c0_7, %c0_8] : memref<32x8xf32, #tpu.memory_space<vmem>>, vector<32x8xf32>
    %cst_9 = arith.constant dense<0.000000e+00> : vector<8x8xf32>
    %7 = tpu.matmul %1, %6, %cst_9 {dimension_numbers = #tpu.dot_dimension_numbers<[1], [0], [0], [1], [0, 0, 1, 1], [], []>, precision = #tpu.contract_precision<fp32>} : vector<8x32xf32>, vector<32x8xf32>, vector<8x8xf32> -> vector<8x8xf32>
    %c0_10 = arith.constant 0 : index
    %c0_11 = arith.constant 0 : index
    %8 = vector.load %arg5[%c0_10, %c0_11] : memref<32x8xf32, #tpu.memory_space<vmem>>, vector<32x8xf32>
    %cst_12 = arith.constant dense<0.000000e+00> : vector<8x8xf32>
    %9 = tpu.matmul %1, %8, %cst_12 {dimension_numbers = #tpu.dot_dimension_numbers<[1], [0], [0], [1], [0, 0, 1, 1], [], []>, precision = #tpu.contract_precision<fp32>} : vector<8x32xf32>, vector<32x8xf32>, vector<8x8xf32> -> vector<8x8xf32>
    %c0_13 = arith.constant 0 : index
    %c0_14 = arith.constant 0 : index
    %10 = vector.load %arg6[%c0_13, %c0_14] : memref<32x32xf32, #tpu.memory_space<vmem>>, vector<32x32xf32>
    %cst_15 = arith.constant dense<0.000000e+00> : vector<8x32xf32>
    %11 = tpu.matmul %1, %10, %cst_15 {dimension_numbers = #tpu.dot_dimension_numbers<[1], [0], [0], [1], [0, 0, 1, 1], [], []>, precision = #tpu.contract_precision<fp32>} : vector<8x32xf32>, vector<32x32xf32>, vector<8x32xf32> -> vector<8x32xf32>
    %c0_16 = arith.constant 0 : index
    %c0_17 = arith.constant 0 : index
    %12 = vector.load %arg7[%c0_16, %c0_17] : memref<4x32xf32, #tpu.memory_space<vmem>>, vector<4x32xf32>
    %13 = vector.extract_strided_slice %12 {offsets = [3, 0], sizes = [1, 32], strides = [1, 1]} : vector<4x32xf32> to vector<1x32xf32>
    %14 = vector.broadcast %13 : vector<1x32xf32> to vector<8x32xf32>
    %15 = arith.mulf %5, %14 : vector<8x32xf32>
    %cst_18 = arith.constant 0.000000e+00 : f32
    %16 = vector.broadcast %cst_18 : f32 to vector<3x32xf32>
    %17 = vector.extract_strided_slice %5 {offsets = [0, 0], sizes = [5, 32], strides = [1, 1]} : vector<8x32xf32> to vector<5x32xf32>
    %18 = tpu.concatenate %16, %17 in 0 : vector<3x32xf32>, vector<5x32xf32> -> vector<8x32xf32>
    %19 = vector.extract_strided_slice %12 {offsets = [0, 0], sizes = [1, 32], strides = [1, 1]} : vector<4x32xf32> to vector<1x32xf32>
    %20 = vector.broadcast %19 : vector<1x32xf32> to vector<8x32xf32>
    %21 = arith.mulf %18, %20 : vector<8x32xf32>
    %22 = arith.addf %15, %21 : vector<8x32xf32>
    %cst_19 = arith.constant 0.000000e+00 : f32
    %23 = vector.broadcast %cst_19 : f32 to vector<2x32xf32>
    %24 = vector.extract_strided_slice %5 {offsets = [0, 0], sizes = [6, 32], strides = [1, 1]} : vector<8x32xf32> to vector<6x32xf32>
    %25 = tpu.concatenate %23, %24 in 0 : vector<2x32xf32>, vector<6x32xf32> -> vector<8x32xf32>
    %26 = vector.extract_strided_slice %12 {offsets = [1, 0], sizes = [1, 32], strides = [1, 1]} : vector<4x32xf32> to vector<1x32xf32>
    %27 = vector.broadcast %26 : vector<1x32xf32> to vector<8x32xf32>
    %28 = arith.mulf %25, %27 : vector<8x32xf32>
    %29 = arith.addf %22, %28 : vector<8x32xf32>
    %cst_20 = arith.constant 0.000000e+00 : f32
    %30 = vector.broadcast %cst_20 : f32 to vector<1x32xf32>
    %31 = vector.extract_strided_slice %5 {offsets = [0, 0], sizes = [7, 32], strides = [1, 1]} : vector<8x32xf32> to vector<7x32xf32>
    %32 = tpu.concatenate %30, %31 in 0 : vector<1x32xf32>, vector<7x32xf32> -> vector<8x32xf32>
    %33 = vector.extract_strided_slice %12 {offsets = [2, 0], sizes = [1, 32], strides = [1, 1]} : vector<4x32xf32> to vector<1x32xf32>
    %34 = vector.broadcast %33 : vector<1x32xf32> to vector<8x32xf32>
    %35 = arith.mulf %32, %34 : vector<8x32xf32>
    %36 = arith.addf %29, %35 : vector<8x32xf32>
    %37 = arith.negf %36 : vector<8x32xf32>
    %38 = math.exp %37 : vector<8x32xf32>
    %cst_21 = arith.constant 1.000000e+00 : f32
    %39 = vector.broadcast %cst_21 : f32 to vector<8x32xf32>
    %40 = arith.addf %39, %38 : vector<8x32xf32>
    %41 = arith.divf %39, %40 : vector<8x32xf32>
    %42 = arith.mulf %36, %41 : vector<8x32xf32>
    %c0_22 = arith.constant 0 : index
    %c0_23 = arith.constant 0 : index
    %43 = vector.load %arg8[%c0_22, %c0_23] : memref<4x8xf32, #tpu.memory_space<vmem>>, vector<4x8xf32>
    %44 = vector.extract_strided_slice %43 {offsets = [3, 0], sizes = [1, 8], strides = [1, 1]} : vector<4x8xf32> to vector<1x8xf32>
    %45 = vector.broadcast %44 : vector<1x8xf32> to vector<8x8xf32>
    %46 = arith.mulf %7, %45 : vector<8x8xf32>
    %cst_24 = arith.constant 0.000000e+00 : f32
    %47 = vector.broadcast %cst_24 : f32 to vector<3x8xf32>
    %48 = vector.extract_strided_slice %7 {offsets = [0, 0], sizes = [5, 8], strides = [1, 1]} : vector<8x8xf32> to vector<5x8xf32>
    %49 = tpu.concatenate %47, %48 in 0 : vector<3x8xf32>, vector<5x8xf32> -> vector<8x8xf32>
    %50 = vector.extract_strided_slice %43 {offsets = [0, 0], sizes = [1, 8], strides = [1, 1]} : vector<4x8xf32> to vector<1x8xf32>
    %51 = vector.broadcast %50 : vector<1x8xf32> to vector<8x8xf32>
    %52 = arith.mulf %49, %51 : vector<8x8xf32>
    %53 = arith.addf %46, %52 : vector<8x8xf32>
    %cst_25 = arith.constant 0.000000e+00 : f32
    %54 = vector.broadcast %cst_25 : f32 to vector<2x8xf32>
    %55 = vector.extract_strided_slice %7 {offsets = [0, 0], sizes = [6, 8], strides = [1, 1]} : vector<8x8xf32> to vector<6x8xf32>
    %56 = tpu.concatenate %54, %55 in 0 : vector<2x8xf32>, vector<6x8xf32> -> vector<8x8xf32>
    %57 = vector.extract_strided_slice %43 {offsets = [1, 0], sizes = [1, 8], strides = [1, 1]} : vector<4x8xf32> to vector<1x8xf32>
    %58 = vector.broadcast %57 : vector<1x8xf32> to vector<8x8xf32>
    %59 = arith.mulf %56, %58 : vector<8x8xf32>
    %60 = arith.addf %53, %59 : vector<8x8xf32>
    %cst_26 = arith.constant 0.000000e+00 : f32
    %61 = vector.broadcast %cst_26 : f32 to vector<1x8xf32>
    %62 = vector.extract_strided_slice %7 {offsets = [0, 0], sizes = [7, 8], strides = [1, 1]} : vector<8x8xf32> to vector<7x8xf32>
    %63 = tpu.concatenate %61, %62 in 0 : vector<1x8xf32>, vector<7x8xf32> -> vector<8x8xf32>
    %64 = vector.extract_strided_slice %43 {offsets = [2, 0], sizes = [1, 8], strides = [1, 1]} : vector<4x8xf32> to vector<1x8xf32>
    %65 = vector.broadcast %64 : vector<1x8xf32> to vector<8x8xf32>
    %66 = arith.mulf %63, %65 : vector<8x8xf32>
    %67 = arith.addf %60, %66 : vector<8x8xf32>
    %68 = arith.negf %67 : vector<8x8xf32>
    %69 = math.exp %68 : vector<8x8xf32>
    %cst_27 = arith.constant 1.000000e+00 : f32
    %70 = vector.broadcast %cst_27 : f32 to vector<8x8xf32>
    %71 = arith.addf %70, %69 : vector<8x8xf32>
    %72 = arith.divf %70, %71 : vector<8x8xf32>
    %73 = arith.mulf %67, %72 : vector<8x8xf32>
    %c0_28 = arith.constant 0 : index
    %c0_29 = arith.constant 0 : index
    %74 = vector.load %arg9[%c0_28, %c0_29] : memref<4x8xf32, #tpu.memory_space<vmem>>, vector<4x8xf32>
    %75 = vector.extract_strided_slice %74 {offsets = [3, 0], sizes = [1, 8], strides = [1, 1]} : vector<4x8xf32> to vector<1x8xf32>
    %76 = vector.broadcast %75 : vector<1x8xf32> to vector<8x8xf32>
    %77 = arith.mulf %9, %76 : vector<8x8xf32>
    %cst_30 = arith.constant 0.000000e+00 : f32
    %78 = vector.broadcast %cst_30 : f32 to vector<3x8xf32>
    %79 = vector.extract_strided_slice %9 {offsets = [0, 0], sizes = [5, 8], strides = [1, 1]} : vector<8x8xf32> to vector<5x8xf32>
    %80 = tpu.concatenate %78, %79 in 0 : vector<3x8xf32>, vector<5x8xf32> -> vector<8x8xf32>
    %81 = vector.extract_strided_slice %74 {offsets = [0, 0], sizes = [1, 8], strides = [1, 1]} : vector<4x8xf32> to vector<1x8xf32>
    %82 = vector.broadcast %81 : vector<1x8xf32> to vector<8x8xf32>
    %83 = arith.mulf %80, %82 : vector<8x8xf32>
    %84 = arith.addf %77, %83 : vector<8x8xf32>
    %cst_31 = arith.constant 0.000000e+00 : f32
    %85 = vector.broadcast %cst_31 : f32 to vector<2x8xf32>
    %86 = vector.extract_strided_slice %9 {offsets = [0, 0], sizes = [6, 8], strides = [1, 1]} : vector<8x8xf32> to vector<6x8xf32>
    %87 = tpu.concatenate %85, %86 in 0 : vector<2x8xf32>, vector<6x8xf32> -> vector<8x8xf32>
    %88 = vector.extract_strided_slice %74 {offsets = [1, 0], sizes = [1, 8], strides = [1, 1]} : vector<4x8xf32> to vector<1x8xf32>
    %89 = vector.broadcast %88 : vector<1x8xf32> to vector<8x8xf32>
    %90 = arith.mulf %87, %89 : vector<8x8xf32>
    %91 = arith.addf %84, %90 : vector<8x8xf32>
    %cst_32 = arith.constant 0.000000e+00 : f32
    %92 = vector.broadcast %cst_32 : f32 to vector<1x8xf32>
    %93 = vector.extract_strided_slice %9 {offsets = [0, 0], sizes = [7, 8], strides = [1, 1]} : vector<8x8xf32> to vector<7x8xf32>
    %94 = tpu.concatenate %92, %93 in 0 : vector<1x8xf32>, vector<7x8xf32> -> vector<8x8xf32>
    %95 = vector.extract_strided_slice %74 {offsets = [2, 0], sizes = [1, 8], strides = [1, 1]} : vector<4x8xf32> to vector<1x8xf32>
    %96 = vector.broadcast %95 : vector<1x8xf32> to vector<8x8xf32>
    %97 = arith.mulf %94, %96 : vector<8x8xf32>
    %98 = arith.addf %91, %97 : vector<8x8xf32>
    %99 = arith.negf %98 : vector<8x8xf32>
    %100 = math.exp %99 : vector<8x8xf32>
    %cst_33 = arith.constant 1.000000e+00 : f32
    %101 = vector.broadcast %cst_33 : f32 to vector<8x8xf32>
    %102 = arith.addf %101, %100 : vector<8x8xf32>
    %103 = arith.divf %101, %102 : vector<8x8xf32>
    %104 = arith.mulf %98, %103 : vector<8x8xf32>
    %c0_34 = arith.constant 0 : index
    %c0_35 = arith.constant 0 : index
    %105 = vector.load %arg11[%c0_34, %c0_35] : memref<1x32xf32, #tpu.memory_space<vmem>>, vector<1x32xf32>
    %106 = vector.broadcast %105 : vector<1x32xf32> to vector<8x32xf32>
    %107 = arith.addf %11, %106 : vector<8x32xf32>
    %cst_36 = arith.constant 2.000000e+01 : f32
    %108 = vector.broadcast %cst_36 : f32 to vector<8x32xf32>
    %109 = arith.cmpf ogt, %107, %108 : vector<8x32xf32>
    %cst_37 = arith.constant 2.000000e+01 : f32
    %110 = vector.broadcast %cst_37 : f32 to vector<8x32xf32>
    %111 = arith.minimumf %107, %110 : vector<8x32xf32>
    %112 = math.exp %111 : vector<8x32xf32>
    %113 = math.log1p %112 : vector<8x32xf32>
    %114 = arith.select %109, %107, %113 : vector<8x32xi1>, vector<8x32xf32>
    %c0_38 = arith.constant 0 : index
    %c0_39 = arith.constant 0 : index
    %115 = vector.load %arg10[%c0_38, %c0_39] : memref<1x32xf32, #tpu.memory_space<vmem>>, vector<1x32xf32>
    %116 = vector.broadcast %115 : vector<1x32xf32> to vector<8x32xf32>
    %117 = arith.mulf %114, %116 : vector<8x32xf32>
    %118 = arith.mulf %114, %42 : vector<8x32xf32>
    %cst_40 = arith.constant 0.000000e+00 : f32
    %119 = vector.broadcast %cst_40 : f32 to vector<1x32xf32>
    %120 = vector.extract_strided_slice %117 {offsets = [0, 0], sizes = [1, 32], strides = [1, 1]} : vector<8x32xf32> to vector<1x32xf32>
    %121 = arith.addf %119, %120 : vector<1x32xf32>
    %122 = vector.extract_strided_slice %117 {offsets = [1, 0], sizes = [1, 32], strides = [1, 1]} : vector<8x32xf32> to vector<1x32xf32>
    %123 = arith.addf %121, %122 : vector<1x32xf32>
    %124 = vector.extract_strided_slice %117 {offsets = [2, 0], sizes = [1, 32], strides = [1, 1]} : vector<8x32xf32> to vector<1x32xf32>
    %125 = arith.addf %123, %124 : vector<1x32xf32>
    %126 = vector.extract_strided_slice %117 {offsets = [3, 0], sizes = [1, 32], strides = [1, 1]} : vector<8x32xf32> to vector<1x32xf32>
    %127 = arith.addf %125, %126 : vector<1x32xf32>
    %128 = vector.extract_strided_slice %117 {offsets = [4, 0], sizes = [1, 32], strides = [1, 1]} : vector<8x32xf32> to vector<1x32xf32>
    %129 = arith.addf %127, %128 : vector<1x32xf32>
    %130 = vector.extract_strided_slice %117 {offsets = [5, 0], sizes = [1, 32], strides = [1, 1]} : vector<8x32xf32> to vector<1x32xf32>
    %131 = arith.addf %129, %130 : vector<1x32xf32>
    %132 = vector.extract_strided_slice %117 {offsets = [6, 0], sizes = [1, 32], strides = [1, 1]} : vector<8x32xf32> to vector<1x32xf32>
    %133 = arith.addf %131, %132 : vector<1x32xf32>
    %134 = vector.extract_strided_slice %117 {offsets = [7, 0], sizes = [1, 32], strides = [1, 1]} : vector<8x32xf32> to vector<1x32xf32>
    %135 = arith.addf %133, %134 : vector<1x32xf32>
    %136 = tpu.concatenate %121, %123, %125, %127, %129, %131, %133, %135 in 0 : vector<1x32xf32>, vector<1x32xf32>, vector<1x32xf32>, vector<1x32xf32>, vector<1x32xf32>, vector<1x32xf32>, vector<1x32xf32>, vector<1x32xf32> -> vector<8x32xf32>
    %137 = vector.extract_strided_slice %136 {offsets = [0, 0], sizes = [1, 32], strides = [1, 1]} : vector<8x32xf32> to vector<1x32xf32>
    %138 = vector.broadcast %137 : vector<1x32xf32> to vector<8x32xf32>
    %139 = arith.subf %138, %136 : vector<8x32xf32>
    %140 = tpu.iota {dimensions = array<i32: 0>} : vector<8x32xi32>
    %c0_i32 = arith.constant 0 : i32
    %141 = vector.broadcast %c0_i32 : i32 to vector<8x32xi32>
    %142 = arith.cmpi sle, %140, %141 : vector<8x32xi32>
    %cst_41 = arith.constant -1.000000e+30 : f32
    %143 = vector.broadcast %cst_41 : f32 to vector<8x32xf32>
    %144 = arith.select %142, %139, %143 : vector<8x32xi1>, vector<8x32xf32>
    %145 = math.exp %144 : vector<8x32xf32>
    %146 = vector.extract_strided_slice %104 {offsets = [0, 0], sizes = [1, 8], strides = [1, 1]} : vector<8x8xf32> to vector<1x8xf32>
    %147 = vector.broadcast %146 : vector<1x8xf32> to vector<8x8xf32>
    %148 = arith.mulf %73, %147 : vector<8x8xf32>
    %cst_42 = arith.constant dense<0.000000e+00> : vector<8xf32>
    %149 = vector.multi_reduction <add>, %148, %cst_42 [1] : vector<8x8xf32> to vector<8xf32>
    %150 = vector.shape_cast %149 : vector<8xf32> to vector<8x1xf32>
    %151 = vector.broadcast %150 : vector<8x1xf32> to vector<8x32xf32>
    %152 = arith.mulf %145, %151 : vector<8x32xf32>
    %153 = arith.mulf %152, %118 : vector<8x32xf32>
    %cst_43 = arith.constant dense<0.000000e+00> : vector<32xf32>
    %154 = vector.multi_reduction <add>, %153, %cst_43 [0] : vector<8x32xf32> to vector<32xf32>
    %155 = vector.shape_cast %154 : vector<32xf32> to vector<1x32xf32>
    %156 = vector.extract_strided_slice %136 {offsets = [1, 0], sizes = [1, 32], strides = [1, 1]} : vector<8x32xf32> to vector<1x32xf32>
    %157 = vector.broadcast %156 : vector<1x32xf32> to vector<8x32xf32>
    %158 = arith.subf %157, %136 : vector<8x32xf32>
    %159 = tpu.iota {dimensions = array<i32: 0>} : vector<8x32xi32>
    %c1_i32 = arith.constant 1 : i32
    %160 = vector.broadcast %c1_i32 : i32 to vector<8x32xi32>
    %161 = arith.cmpi sle, %159, %160 : vector<8x32xi32>
    %cst_44 = arith.constant -1.000000e+30 : f32
    %162 = vector.broadcast %cst_44 : f32 to vector<8x32xf32>
    %163 = arith.select %161, %158, %162 : vector<8x32xi1>, vector<8x32xf32>
    %164 = math.exp %163 : vector<8x32xf32>
    %165 = vector.extract_strided_slice %104 {offsets = [1, 0], sizes = [1, 8], strides = [1, 1]} : vector<8x8xf32> to vector<1x8xf32>
    %166 = vector.broadcast %165 : vector<1x8xf32> to vector<8x8xf32>
    %167 = arith.mulf %73, %166 : vector<8x8xf32>
    %cst_45 = arith.constant dense<0.000000e+00> : vector<8xf32>
    %168 = vector.multi_reduction <add>, %167, %cst_45 [1] : vector<8x8xf32> to vector<8xf32>
    %169 = vector.shape_cast %168 : vector<8xf32> to vector<8x1xf32>
    %170 = vector.broadcast %169 : vector<8x1xf32> to vector<8x32xf32>
    %171 = arith.mulf %164, %170 : vector<8x32xf32>
    %172 = arith.mulf %171, %118 : vector<8x32xf32>
    %cst_46 = arith.constant dense<0.000000e+00> : vector<32xf32>
    %173 = vector.multi_reduction <add>, %172, %cst_46 [0] : vector<8x32xf32> to vector<32xf32>
    %174 = vector.shape_cast %173 : vector<32xf32> to vector<1x32xf32>
    %175 = vector.extract_strided_slice %136 {offsets = [2, 0], sizes = [1, 32], strides = [1, 1]} : vector<8x32xf32> to vector<1x32xf32>
    %176 = vector.broadcast %175 : vector<1x32xf32> to vector<8x32xf32>
    %177 = arith.subf %176, %136 : vector<8x32xf32>
    %178 = tpu.iota {dimensions = array<i32: 0>} : vector<8x32xi32>
    %c2_i32 = arith.constant 2 : i32
    %179 = vector.broadcast %c2_i32 : i32 to vector<8x32xi32>
    %180 = arith.cmpi sle, %178, %179 : vector<8x32xi32>
    %cst_47 = arith.constant -1.000000e+30 : f32
    %181 = vector.broadcast %cst_47 : f32 to vector<8x32xf32>
    %182 = arith.select %180, %177, %181 : vector<8x32xi1>, vector<8x32xf32>
    %183 = math.exp %182 : vector<8x32xf32>
    %184 = vector.extract_strided_slice %104 {offsets = [2, 0], sizes = [1, 8], strides = [1, 1]} : vector<8x8xf32> to vector<1x8xf32>
    %185 = vector.broadcast %184 : vector<1x8xf32> to vector<8x8xf32>
    %186 = arith.mulf %73, %185 : vector<8x8xf32>
    %cst_48 = arith.constant dense<0.000000e+00> : vector<8xf32>
    %187 = vector.multi_reduction <add>, %186, %cst_48 [1] : vector<8x8xf32> to vector<8xf32>
    %188 = vector.shape_cast %187 : vector<8xf32> to vector<8x1xf32>
    %189 = vector.broadcast %188 : vector<8x1xf32> to vector<8x32xf32>
    %190 = arith.mulf %183, %189 : vector<8x32xf32>
    %191 = arith.mulf %190, %118 : vector<8x32xf32>
    %cst_49 = arith.constant dense<0.000000e+00> : vector<32xf32>
    %192 = vector.multi_reduction <add>, %191, %cst_49 [0] : vector<8x32xf32> to vector<32xf32>
    %193 = vector.shape_cast %192 : vector<32xf32> to vector<1x32xf32>
    %194 = vector.extract_strided_slice %136 {offsets = [3, 0], sizes = [1, 32], strides = [1, 1]} : vector<8x32xf32> to vector<1x32xf32>
    %195 = vector.broadcast %194 : vector<1x32xf32> to vector<8x32xf32>
    %196 = arith.subf %195, %136 : vector<8x32xf32>
    %197 = tpu.iota {dimensions = array<i32: 0>} : vector<8x32xi32>
    %c3_i32 = arith.constant 3 : i32
    %198 = vector.broadcast %c3_i32 : i32 to vector<8x32xi32>
    %199 = arith.cmpi sle, %197, %198 : vector<8x32xi32>
    %cst_50 = arith.constant -1.000000e+30 : f32
    %200 = vector.broadcast %cst_50 : f32 to vector<8x32xf32>
    %201 = arith.select %199, %196, %200 : vector<8x32xi1>, vector<8x32xf32>
    %202 = math.exp %201 : vector<8x32xf32>
    %203 = vector.extract_strided_slice %104 {offsets = [3, 0], sizes = [1, 8], strides = [1, 1]} : vector<8x8xf32> to vector<1x8xf32>
    %204 = vector.broadcast %203 : vector<1x8xf32> to vector<8x8xf32>
    %205 = arith.mulf %73, %204 : vector<8x8xf32>
    %cst_51 = arith.constant dense<0.000000e+00> : vector<8xf32>
    %206 = vector.multi_reduction <add>, %205, %cst_51 [1] : vector<8x8xf32> to vector<8xf32>
    %207 = vector.shape_cast %206 : vector<8xf32> to vector<8x1xf32>
    %208 = vector.broadcast %207 : vector<8x1xf32> to vector<8x32xf32>
    %209 = arith.mulf %202, %208 : vector<8x32xf32>
    %210 = arith.mulf %209, %118 : vector<8x32xf32>
    %cst_52 = arith.constant dense<0.000000e+00> : vector<32xf32>
    %211 = vector.multi_reduction <add>, %210, %cst_52 [0] : vector<8x32xf32> to vector<32xf32>
    %212 = vector.shape_cast %211 : vector<32xf32> to vector<1x32xf32>
    %213 = vector.extract_strided_slice %136 {offsets = [4, 0], sizes = [1, 32], strides = [1, 1]} : vector<8x32xf32> to vector<1x32xf32>
    %214 = vector.broadcast %213 : vector<1x32xf32> to vector<8x32xf32>
    %215 = arith.subf %214, %136 : vector<8x32xf32>
    %216 = tpu.iota {dimensions = array<i32: 0>} : vector<8x32xi32>
    %c4_i32 = arith.constant 4 : i32
    %217 = vector.broadcast %c4_i32 : i32 to vector<8x32xi32>
    %218 = arith.cmpi sle, %216, %217 : vector<8x32xi32>
    %cst_53 = arith.constant -1.000000e+30 : f32
    %219 = vector.broadcast %cst_53 : f32 to vector<8x32xf32>
    %220 = arith.select %218, %215, %219 : vector<8x32xi1>, vector<8x32xf32>
    %221 = math.exp %220 : vector<8x32xf32>
    %222 = vector.extract_strided_slice %104 {offsets = [4, 0], sizes = [1, 8], strides = [1, 1]} : vector<8x8xf32> to vector<1x8xf32>
    %223 = vector.broadcast %222 : vector<1x8xf32> to vector<8x8xf32>
    %224 = arith.mulf %73, %223 : vector<8x8xf32>
    %cst_54 = arith.constant dense<0.000000e+00> : vector<8xf32>
    %225 = vector.multi_reduction <add>, %224, %cst_54 [1] : vector<8x8xf32> to vector<8xf32>
    %226 = vector.shape_cast %225 : vector<8xf32> to vector<8x1xf32>
    %227 = vector.broadcast %226 : vector<8x1xf32> to vector<8x32xf32>
    %228 = arith.mulf %221, %227 : vector<8x32xf32>
    %229 = arith.mulf %228, %118 : vector<8x32xf32>
    %cst_55 = arith.constant dense<0.000000e+00> : vector<32xf32>
    %230 = vector.multi_reduction <add>, %229, %cst_55 [0] : vector<8x32xf32> to vector<32xf32>
    %231 = vector.shape_cast %230 : vector<32xf32> to vector<1x32xf32>
    %232 = vector.extract_strided_slice %136 {offsets = [5, 0], sizes = [1, 32], strides = [1, 1]} : vector<8x32xf32> to vector<1x32xf32>
    %233 = vector.broadcast %232 : vector<1x32xf32> to vector<8x32xf32>
    %234 = arith.subf %233, %136 : vector<8x32xf32>
    %235 = tpu.iota {dimensions = array<i32: 0>} : vector<8x32xi32>
    %c5_i32 = arith.constant 5 : i32
    %236 = vector.broadcast %c5_i32 : i32 to vector<8x32xi32>
    %237 = arith.cmpi sle, %235, %236 : vector<8x32xi32>
    %cst_56 = arith.constant -1.000000e+30 : f32
    %238 = vector.broadcast %cst_56 : f32 to vector<8x32xf32>
    %239 = arith.select %237, %234, %238 : vector<8x32xi1>, vector<8x32xf32>
    %240 = math.exp %239 : vector<8x32xf32>
    %241 = vector.extract_strided_slice %104 {offsets = [5, 0], sizes = [1, 8], strides = [1, 1]} : vector<8x8xf32> to vector<1x8xf32>
    %242 = vector.broadcast %241 : vector<1x8xf32> to vector<8x8xf32>
    %243 = arith.mulf %73, %242 : vector<8x8xf32>
    %cst_57 = arith.constant dense<0.000000e+00> : vector<8xf32>
    %244 = vector.multi_reduction <add>, %243, %cst_57 [1] : vector<8x8xf32> to vector<8xf32>
    %245 = vector.shape_cast %244 : vector<8xf32> to vector<8x1xf32>
    %246 = vector.broadcast %245 : vector<8x1xf32> to vector<8x32xf32>
    %247 = arith.mulf %240, %246 : vector<8x32xf32>
    %248 = arith.mulf %247, %118 : vector<8x32xf32>
    %cst_58 = arith.constant dense<0.000000e+00> : vector<32xf32>
    %249 = vector.multi_reduction <add>, %248, %cst_58 [0] : vector<8x32xf32> to vector<32xf32>
    %250 = vector.shape_cast %249 : vector<32xf32> to vector<1x32xf32>
    %251 = vector.extract_strided_slice %136 {offsets = [6, 0], sizes = [1, 32], strides = [1, 1]} : vector<8x32xf32> to vector<1x32xf32>
    %252 = vector.broadcast %251 : vector<1x32xf32> to vector<8x32xf32>
    %253 = arith.subf %252, %136 : vector<8x32xf32>
    %254 = tpu.iota {dimensions = array<i32: 0>} : vector<8x32xi32>
    %c6_i32 = arith.constant 6 : i32
    %255 = vector.broadcast %c6_i32 : i32 to vector<8x32xi32>
    %256 = arith.cmpi sle, %254, %255 : vector<8x32xi32>
    %cst_59 = arith.constant -1.000000e+30 : f32
    %257 = vector.broadcast %cst_59 : f32 to vector<8x32xf32>
    %258 = arith.select %256, %253, %257 : vector<8x32xi1>, vector<8x32xf32>
    %259 = math.exp %258 : vector<8x32xf32>
    %260 = vector.extract_strided_slice %104 {offsets = [6, 0], sizes = [1, 8], strides = [1, 1]} : vector<8x8xf32> to vector<1x8xf32>
    %261 = vector.broadcast %260 : vector<1x8xf32> to vector<8x8xf32>
    %262 = arith.mulf %73, %261 : vector<8x8xf32>
    %cst_60 = arith.constant dense<0.000000e+00> : vector<8xf32>
    %263 = vector.multi_reduction <add>, %262, %cst_60 [1] : vector<8x8xf32> to vector<8xf32>
    %264 = vector.shape_cast %263 : vector<8xf32> to vector<8x1xf32>
    %265 = vector.broadcast %264 : vector<8x1xf32> to vector<8x32xf32>
    %266 = arith.mulf %259, %265 : vector<8x32xf32>
    %267 = arith.mulf %266, %118 : vector<8x32xf32>
    %cst_61 = arith.constant dense<0.000000e+00> : vector<32xf32>
    %268 = vector.multi_reduction <add>, %267, %cst_61 [0] : vector<8x32xf32> to vector<32xf32>
    %269 = vector.shape_cast %268 : vector<32xf32> to vector<1x32xf32>
    %270 = vector.extract_strided_slice %136 {offsets = [7, 0], sizes = [1, 32], strides = [1, 1]} : vector<8x32xf32> to vector<1x32xf32>
    %271 = vector.broadcast %270 : vector<1x32xf32> to vector<8x32xf32>
    %272 = arith.subf %271, %136 : vector<8x32xf32>
    %273 = tpu.iota {dimensions = array<i32: 0>} : vector<8x32xi32>
    %c7_i32 = arith.constant 7 : i32
    %274 = vector.broadcast %c7_i32 : i32 to vector<8x32xi32>
    %275 = arith.cmpi sle, %273, %274 : vector<8x32xi32>
    %cst_62 = arith.constant -1.000000e+30 : f32
    %276 = vector.broadcast %cst_62 : f32 to vector<8x32xf32>
    %277 = arith.select %275, %272, %276 : vector<8x32xi1>, vector<8x32xf32>
    %278 = math.exp %277 : vector<8x32xf32>
    %279 = vector.extract_strided_slice %104 {offsets = [7, 0], sizes = [1, 8], strides = [1, 1]} : vector<8x8xf32> to vector<1x8xf32>
    %280 = vector.broadcast %279 : vector<1x8xf32> to vector<8x8xf32>
    %281 = arith.mulf %73, %280 : vector<8x8xf32>
    %cst_63 = arith.constant dense<0.000000e+00> : vector<8xf32>
    %282 = vector.multi_reduction <add>, %281, %cst_63 [1] : vector<8x8xf32> to vector<8xf32>
    %283 = vector.shape_cast %282 : vector<8xf32> to vector<8x1xf32>
    %284 = vector.broadcast %283 : vector<8x1xf32> to vector<8x32xf32>
    %285 = arith.mulf %278, %284 : vector<8x32xf32>
    %286 = arith.mulf %285, %118 : vector<8x32xf32>
    %cst_64 = arith.constant dense<0.000000e+00> : vector<32xf32>
    %287 = vector.multi_reduction <add>, %286, %cst_64 [0] : vector<8x32xf32> to vector<32xf32>
    %288 = vector.shape_cast %287 : vector<32xf32> to vector<1x32xf32>
    %289 = tpu.concatenate %155, %174, %193, %212, %231, %250, %269, %288 in 0 : vector<1x32xf32>, vector<1x32xf32>, vector<1x32xf32>, vector<1x32xf32>, vector<1x32xf32>, vector<1x32xf32>, vector<1x32xf32>, vector<1x32xf32> -> vector<8x32xf32>
    %c0_65 = arith.constant 0 : index
    %c0_66 = arith.constant 0 : index
    %290 = vector.load %arg12[%c0_65, %c0_66] : memref<1x32xf32, #tpu.memory_space<vmem>>, vector<1x32xf32>
    %291 = vector.broadcast %290 : vector<1x32xf32> to vector<8x32xf32>
    %292 = arith.mulf %291, %42 : vector<8x32xf32>
    %293 = arith.addf %289, %292 : vector<8x32xf32>
    %294 = arith.negf %3 : vector<8x32xf32>
    %295 = math.exp %294 : vector<8x32xf32>
    %cst_67 = arith.constant 1.000000e+00 : f32
    %296 = vector.broadcast %cst_67 : f32 to vector<8x32xf32>
    %297 = arith.addf %296, %295 : vector<8x32xf32>
    %298 = arith.divf %296, %297 : vector<8x32xf32>
    %299 = arith.mulf %3, %298 : vector<8x32xf32>
    %300 = arith.mulf %293, %299 : vector<8x32xf32>
    %301 = arith.mulf %300, %300 : vector<8x32xf32>
    %cst_68 = arith.constant dense<0.000000e+00> : vector<8xf32>
    %302 = vector.multi_reduction <add>, %301, %cst_68 [1] : vector<8x32xf32> to vector<8xf32>
    %303 = vector.shape_cast %302 : vector<8xf32> to vector<8x1xf32>
    %cst_69 = arith.constant 3.200000e+01 : f32
    %304 = vector.broadcast %cst_69 : f32 to vector<8x1xf32>
    %305 = arith.divf %303, %304 : vector<8x1xf32>
    %cst_70 = arith.constant 9.99999974E-6 : f32
    %306 = vector.broadcast %cst_70 : f32 to vector<8x1xf32>
    %307 = arith.addf %305, %306 : vector<8x1xf32>
    %308 = math.rsqrt %307 : vector<8x1xf32>
    %309 = vector.broadcast %308 : vector<8x1xf32> to vector<8x32xf32>
    %310 = arith.mulf %300, %309 : vector<8x32xf32>
    %c0_71 = arith.constant 0 : index
    %c0_72 = arith.constant 0 : index
    %311 = vector.load %arg13[%c0_71, %c0_72] : memref<1x32xf32, #tpu.memory_space<vmem>>, vector<1x32xf32>
    %312 = vector.broadcast %311 : vector<1x32xf32> to vector<8x32xf32>
    %313 = arith.mulf %310, %312 : vector<8x32xf32>
    %c0_73 = arith.constant 0 : index
    %c0_74 = arith.constant 0 : index
    %314 = vector.load %arg14[%c0_73, %c0_74] : memref<32x32xf32, #tpu.memory_space<vmem>>, vector<32x32xf32>
    %cst_75 = arith.constant dense<0.000000e+00> : vector<8x32xf32>
    %315 = tpu.matmul %313, %314, %cst_75 {dimension_numbers = #tpu.dot_dimension_numbers<[1], [0], [0], [1], [0, 0, 1, 1], [], []>, precision = #tpu.contract_precision<fp32>} : vector<8x32xf32>, vector<32x32xf32>, vector<8x32xf32> -> vector<8x32xf32>
    %c0_76 = arith.constant 0 : index
    %c0_77 = arith.constant 0 : index
    %c0_78 = arith.constant 0 : index
    %316 = vector.load %arg15[%c0_76, %c0_77, %c0_78] : memref<1x8x32xf32, #tpu.memory_space<vmem>>, vector<1x8x32xf32>
    %317 = vector.shape_cast %316 : vector<1x8x32xf32> to vector<8x32xf32>
    %318 = vector.shape_cast %315 : vector<8x32xf32> to vector<1x8x32xf32>
    tpu.vector_store %arg15[%c0_76, %c0_77, %c0_78], %318 {strides = array<i32>} : memref<1x8x32xf32, #tpu.memory_space<vmem>>, vector<1x8x32xf32>,
    return
  }
  func.func @transform_0(%arg0: i32) -> (i32, i32, i32) {
    %c0_i32 = arith.constant 0 : i32
    %c0_i32_0 = arith.constant 0 : i32
    %c0_i32_1 = arith.constant 0 : i32
    return %arg0, %c0_i32, %c0_i32_0 : i32, i32, i32
  }
  func.func @transform_1(%arg0: i32) -> (i32, i32) {
    %c0_i32 = arith.constant 0 : i32
    %c0_i32_0 = arith.constant 0 : i32
    %c0_i32_1 = arith.constant 0 : i32
    return %c0_i32, %c0_i32_0 : i32, i32
  }
  func.func @transform_2(%arg0: i32) -> (i32, i32) {
    %c0_i32 = arith.constant 0 : i32
    %c0_i32_0 = arith.constant 0 : i32
    %c0_i32_1 = arith.constant 0 : i32
    return %c0_i32, %c0_i32_0 : i32, i32
  }
  func.func @transform_3(%arg0: i32) -> (i32, i32) {
    %c0_i32 = arith.constant 0 : i32
    %c0_i32_0 = arith.constant 0 : i32
    %c0_i32_1 = arith.constant 0 : i32
    return %c0_i32, %c0_i32_0 : i32, i32
  }
  func.func @transform_4(%arg0: i32) -> (i32, i32) {
    %c0_i32 = arith.constant 0 : i32
    %c0_i32_0 = arith.constant 0 : i32
    %c0_i32_1 = arith.constant 0 : i32
    return %c0_i32, %c0_i32_0 : i32, i32
  }
  func.func @transform_5(%arg0: i32) -> (i32, i32) {
    %c0_i32 = arith.constant 0 : i32
    %c0_i32_0 = arith.constant 0 : i32
    %c0_i32_1 = arith.constant 0 : i32
    return %c0_i32, %c0_i32_0 : i32, i32
  }
  func.func @transform_6(%arg0: i32) -> (i32, i32) {
    %c0_i32 = arith.constant 0 : i32
    %c0_i32_0 = arith.constant 0 : i32
    %c0_i32_1 = arith.constant 0 : i32
    return %c0_i32, %c0_i32_0 : i32, i32
  }
  func.func @transform_7(%arg0: i32) -> (i32, i32) {
    %c0_i32 = arith.constant 0 : i32
    %c0_i32_0 = arith.constant 0 : i32
    %c0_i32_1 = arith.constant 0 : i32
    return %c0_i32, %c0_i32_0 : i32, i32
  }
  func.func @transform_8(%arg0: i32) -> (i32, i32) {
    %c0_i32 = arith.constant 0 : i32
    %c0_i32_0 = arith.constant 0 : i32
    %c0_i32_1 = arith.constant 0 : i32
    return %c0_i32, %c0_i32_0 : i32, i32
  }
  func.func @transform_9(%arg0: i32) -> (i32, i32) {
    %c0_i32 = arith.constant 0 : i32
    %c0_i32_0 = arith.constant 0 : i32
    %c0_i32_1 = arith.constant 0 : i32
    return %c0_i32, %c0_i32_0 : i32, i32
  }
  func.func @transform_10(%arg0: i32) -> (i32, i32) {
    %c0_i32 = arith.constant 0 : i32
    %c0_i32_0 = arith.constant 0 : i32
    %c0_i32_1 = arith.constant 0 : i32
    return %c0_i32, %c0_i32_0 : i32, i32
  }
  func.func @transform_11(%arg0: i32) -> (i32, i32) {
    %c0_i32 = arith.constant 0 : i32
    %c0_i32_0 = arith.constant 0 : i32
    %c0_i32_1 = arith.constant 0 : i32
    return %c0_i32, %c0_i32_0 : i32, i32
  }
  func.func @transform_12(%arg0: i32) -> (i32, i32) {
    %c0_i32 = arith.constant 0 : i32
    %c0_i32_0 = arith.constant 0 : i32
    %c0_i32_1 = arith.constant 0 : i32
    return %c0_i32, %c0_i32_0 : i32, i32
  }
  func.func @transform_13(%arg0: i32) -> (i32, i32) {
    %c0_i32 = arith.constant 0 : i32
    %c0_i32_0 = arith.constant 0 : i32
    %c0_i32_1 = arith.constant 0 : i32
    return %c0_i32, %c0_i32_0 : i32, i32
  }
  func.func @transform_14(%arg0: i32) -> (i32, i32, i32) {
    %c0_i32 = arith.constant 0 : i32
    %c0_i32_0 = arith.constant 0 : i32
    %c0_i32_1 = arith.constant 0 : i32
    return %arg0, %c0_i32, %c0_i32_0 : i32, i32, i32
  }
}

</mosaic_0001>

<bundles_post_ra>
// kernel: tpu_custom_call.1
= control target key start
LH: loop header
LB: loop body
LE: loop exit
PB: predicated region body
PF: predicated region fallthrough
CT: control target
= control target key end

     0   :  { %s6154_s0 = inlined_call_operand.hbm [shape: f32[2,8,32], index: 0, kind: input, shape index: {}]   ;;  %s6155_s1 = inlined_call_operand.vmem [shape: f32[32,32], index: 1, kind: input, shape index: {}]   ;;  %s6156_s2 = inlined_call_operand.vmem [shape: f32[32,32], index: 2, kind: input, shape index: {}]   ;;  %s6157_s3 = inlined_call_operand.vmem [shape: f32[32,8], index: 3, kind: input, shape index: {}]   ;;  %s6158_s4 = inlined_call_operand.vmem [shape: f32[32,8], index: 4, kind: input, shape index: {}]   ;;  %s6159_s5 = inlined_call_operand.hbm [shape: f32[32,32], index: 5, kind: input, shape index: {}]   ;;  %s6160_s6 = inlined_call_operand.hbm [shape: f32[4,32], index: 6, kind: input, shape index: {}]   ;;  %s6161_s7 = inlined_call_operand.hbm [shape: f32[4,8], index: 7, kind: input, shape index: {}]   ;;  %s6162_s8 = inlined_call_operand.hbm [shape: f32[4,8], index: 8, kind: input, shape index: {}]   ;;  %s6163_s9 = inlined_call_operand.hbm [shape: f32[1,32], index: 9, kind: input, shape index: {}]   ;;  %s6164_s10 = inlined_call_operand.vmem [shape: f32[1,32], index: 10, kind: input, shape index: {}]   ;;  %s6165_s11 = inlined_call_operand.vmem [shape: f32[1,32], index: 11, kind: input, shape index: {}]   ;;  %s6166_s12 = inlined_call_operand.vmem [shape: f32[1,32], index: 12, kind: input, shape index: {}]   ;;  %s6167_s13 = inlined_call_operand.vmem [shape: f32[32,32], index: 13, kind: input, shape index: {}]   ;;  %s6168_s14 = inlined_call_operand.hbm [shape: f32[2,8,32], index: 14, kind: output, shape index: {}]  }
   0x1   :  { %6175 = sst [smem:[#allocation21_spill]] %s6159_s5 }
   0x2   :  { %6176 = sst [smem:[#allocation22_spill]] %s6160_s6 }
   0x3   :  { %6177 = sst [smem:[#allocation23_spill]] %s6161_s7 }
   0x4   :  { %6178 = sst [smem:[#allocation24_spill]] %s6162_s8 }
   0x5   :  { %6179 = sst [smem:[#allocation25_spill]] %s6163_s9 }
   0x6   :  { %6180 = sst [smem:[#allocation26_spill]] %s6166_s12 }
   0x7   :  { %6181 = sst [smem:[#allocation27_spill]] %s6168_s14 }
   0x8   :  { %19 = vsyncpa [#allocation3], 0 }
   0x9   :  { %21 = vsyncpa [#allocation3 + $0x1], 0 }
   0xa   :  { %22 = vsyncpa [#allocation6], 0 }
   0xb   :  { %23 = vsyncpa [#allocation9], 0 }
   0xc   :  { %24 = vsyncpa [#allocation12], 0 }
   0xd   :  { %25 = vsyncpa [#allocation4], 0 }
   0xe   :  { %27 = vsyncpa [#allocation4 + $0x1], 0  ;;  %s5153_s29 = smov 0   ;;  %s5155_s30 = smov 0  }
   0xf   :  { %s5157_s15 = smov 0   ;;  %s5159_s16 = smov 0  }
  0x10 LB: > { %6182 = sst [smem:[#allocation19_spill]] %s5061_s15  ;;  %s5067_s17 = smov [#allocation5]   ;;  %s5065_s16 = sphi %s5159_s16, %s6214_s16   ;;  %s5061_s15 = sphi %s5157_s15, %s6211_s15   ;;  %s5057_s30 = sphi %s5155_s30, %s6213_s30   ;;  %s5053_s29 = sphi %s5153_s29, %s6212_s29  }
  0x11   : > { %s387_s18 = sshll.u32 %s5067_s17, 4  ;;  %s5174_s19 = sadd.s32 4294967295, %s5065_s16   ;;  %s388_s18 = int_to_ptr.vmem [resolvable:$true] %s387_s18 }
  0x12   : > { %p4087_p0 = scmp.ge.s32.totalorder %s5065_s16, 1  ;;  %p6170_p1 = scmp.eq.s32.totalorder %s5174_s19, 0 }
  0x13   : > { %p363_p2 = scmp.lt.s32.totalorder %s5065_s16, 3  ;;  %s5068_s21 = smov [#allocation8]  }
  0x14   : > { %s412_s22 = sshll.u32 %s5068_s21, 4  ;;  %s5069_s24 = smov [#allocation7]   ;;  %s413_s22 = int_to_ptr.vmem [resolvable:$true] %s412_s22 }
  0x15   : > { %p5179_p3 = pnand %p4087_p0, %p363_p2  ;;  %s401_s25 = sshll.u32 %s5069_s24, 4  ;;  %s5192_s25 = int_to_ptr.vmem [resolvable:$true] %s401_s25 }
  0x16   : > { %s4842_s27 = scalar_lea.vmem %s388_s18, 512  ;;  %p4850_p11 = scmp.lt.s32.totalorder %s388_s18, %s388_s18 }
  0x17   : > { %s6183_s20 = scalar_select %p5179_p3, 1, 0 }
  0x18   : > { %p4716_p5 = pneg %p5179_p3  ;;  %p4843_p8 = scmp.ne.s32.totalorder %s388_s18, %s4842_s27 }
  0x19   : > { %p4851_p12 = scmp.lt.s32.totalorder %s4842_s27, %s4842_s27 }
  0x1a   : > { %p5188_p6 = pnand %p4716_p5, %p6170_p1 }
  0x1b   : > { %p4852_p13 = por %p4851_p12, %p4850_p11 }
  0x1c   : > { %p5196_p7 = pneg %p5188_p6 }
  0x1e   : > { %p4845_p9 = pnand %p4843_p8, %p5196_p7 }
  0x20   : > { %p4846_p10 = pneg %p4845_p9 }
  0x22   : > { %p4853_p0 = pnand %p4852_p13, %p4846_p10 }
  0x24   : > { %4856 = shalt.err (!%p4853_p0)
}
  0x25   : > { %s5070_s28 = smov 128   ;;  %s5071_s17 = smov 8  }
  0x26   : > { %s6186_s5 = sld [smem:[#allocation21_spill]]  ;;  %s4868_s14 = scalar_lea.vmem %s413_s22, 64 }
  0x27   : > { %p4869_p2 = scmp.ne.s32.totalorder %s413_s22, %s4868_s14  ;;  %p4876_p9 = scmp.lt.s32.totalorder %s413_s22, %s413_s22 }
  0x28   : > { %p4877_p4 = scmp.lt.s32.totalorder %s4868_s14, %s4868_s14 }
  0x29   : > { %p4871_p5 = pnand %p4869_p2, %p5196_p7 }
  0x2a   : > { %p4878_p1 = por %p4877_p4, %p4876_p9 }
  0x2b   : > { %p4872_p8 = pneg %p4871_p5 }
  0x2c   : > { %4719 = dma.hbm_to_vmem [thread:$0]  (!%p5188_p6), %s6186_s5, 512, %s388_s18, [#allocation6], %s5070_s28, %s5070_s28, %s5071_s17  }
  0x2d   : > { %p4879_p11 = pnand %p4878_p1, %p4872_p8 }
  0x2f   : > { %4882 = shalt.err (!%p4879_p11)
}
  0x30   : > { %s6187_s7 = sld [smem:[#allocation23_spill]]  ;;  %s4894_s18 = scalar_lea.vmem %s5192_s25, 64 }
  0x31   : > { %p4895_p10 = scmp.ne.s32.totalorder %s5192_s25, %s4894_s18  ;;  %p4902_p0 = scmp.lt.s32.totalorder %s5192_s25, %s5192_s25 }
  0x32   : > { %p4903_p4 = scmp.lt.s32.totalorder %s4894_s18, %s4894_s18 }
  0x33   : > { %p4897_p12 = pnand %p4895_p10, %p5196_p7 }
  0x34   : > { %p4904_p1 = por %p4903_p4, %p4902_p0 }
  0x35   : > { %p4898_p13 = pneg %p4897_p12 }
  0x36   : > { %4725 = dma.hbm_to_vmem [thread:$0]  (!%p5188_p6), %s6187_s7, 64, %s413_s22, [#allocation9]  }
  0x37   : > { %p4905_p2 = pnand %p4904_p1, %p4898_p13 }
  0x39   : > { %4908 = shalt.err (!%p4905_p2)
}
  0x3a   : > { %s6188_s6 = sld [smem:[#allocation22_spill]]  ;;  %s5072_s22 = smov [#allocation10]  }
  0x3b   : > { %s423_s28 = sshll.u32 %s5072_s22, 4  ;;  %s5073_s17 = smov [#allocation11]   ;;  %s424_s28 = int_to_ptr.vmem [resolvable:$true] %s423_s28 }
  0x3c   : > { %s434_s21 = sshll.u32 %s5073_s17, 4  ;;  %s4920_s24 = scalar_lea.vmem %s424_s28, 64  ;;  %s435_s21 = int_to_ptr.vmem [resolvable:$true] %s434_s21 }
  0x3d   : > { %p4921_p5 = scmp.ne.s32.totalorder %s424_s28, %s4920_s24  ;;  %p4928_p11 = scmp.lt.s32.totalorder %s424_s28, %s424_s28 }
  0x3e   : > { %p4929_p10 = scmp.lt.s32.totalorder %s4920_s24, %s4920_s24 }
  0x3f   : > { %p4923_p8 = pnand %p4921_p5, %p5196_p7 }
  0x40   : > { %4722 = dma.hbm_to_vmem [thread:$0]  (!%p5188_p6), %s6188_s6, 64, %s5192_s25, [#allocation6]  }
  0x41   : > { %p4924_p9 = pneg %p4923_p8  ;;  %p4930_p12 = por %p4929_p10, %p4928_p11 }
  0x43   : > { %p4931_p13 = pnand %p4930_p12, %p4924_p9 }
  0x45   : > { %4934 = shalt.err (!%p4931_p13)
}
  0x46   : > { %s6189_s8 = sld [smem:[#allocation24_spill]]  ;;  %s4946_s25 = scalar_lea.vmem %s435_s21, 16 }
  0x47   : > { %p4947_p0 = scmp.ne.s32.totalorder %s435_s21, %s4946_s25  ;;  %s4953_s12 = scalar_lea.vmem %s435_s21, 32 }
  0x48   : > { %p4954_p2 = scmp.lt.s32.totalorder %s435_s21, %s435_s21  ;;  %p4955_p5 = scmp.lt.s32.totalorder %s4953_s12, %s4946_s25 }
  0x49   : > { %p4949_p4 = pnand %p4947_p0, %p5196_p7 }
  0x4a   : > { %p4956_p8 = por %p4955_p5, %p4954_p2 }
  0x4b   : > { %p4950_p1 = pneg %p4949_p4 }
  0x4c   : > { %4728 = dma.hbm_to_vmem [thread:$0]  (!%p5188_p6), %s6189_s8, 64, %s424_s28, [#allocation9]  }
  0x4d   : > { %p4957_p11 = pnand %p4956_p8, %p4950_p1 }
  0x4f   : > { %4960 = shalt.err (!%p4957_p11)
}
  0x50   : > { %s6190_s9 = sld [smem:[#allocation25_spill]]  ;;  %s4086_s26 = sadd.s32 4294967294, %s5065_s16  }
  0x51   : > { %s5242_s23 = sadd.s32 1, %s5065_s16   ;;  %s40_s28 = sadd.s32 1, %s5061_s15 }
  0x52   : > { %s37_s17 = ssub.s32 %s5065_s16, %s5242_s23  ;;  %p47_p7 = scmp.ne.s32.totalorder %s5061_s15, %s5057_s30 }
  0x53   : > { %p38_p9 = scmp.eq.s32.totalorder %s37_s17, 0  ;;  %p48_p10 = scmp.eq.s32.totalorder %s5065_s16, 0 }
  0x54   : > { %p53_p12 = scmp.ne.s32.totalorder %s5057_s30, %s5053_s29  ;;  %p350_p13 = scmp.eq.s32.totalorder %s5174_s19, 1 }
  0x55   : > { %s5254_s24 = scalar_select %p38_p9, %s5061_s15, %s40_s28  }
  0x56   : > { %4731 = dma.hbm_to_vmem [thread:$0]  (!%p5188_p6), %s6190_s9, 16, %s435_s21, [#allocation12]  }
  0x57   : > { %6191 = sst [smem:[#allocation20_spill]] %s5254_s24  ;;  %p49_p0 = por %p48_p10, %p47_p7 }
  0x58   : > { %p6192_p4 = scmp.eq.s32.totalorder %s5174_s19, 0  ;;  %p5262_p6 = por %p350_p13, %p47_p7 }
  0x59   : > { %p356_p2 = scmp.eq.s32.totalorder %s4086_s26, 1  ;;  %p4745_p5 = scmp.lt.s32.totalorder %s5065_s16, 2 }
  0x5a   : > { %p5258_p1 = por %p6192_p4, %p53_p12  ;;  %s457_s18 = sand.u32 1, %s5061_s15  }
  0x5b   : > { %s6194_s21 = scalar_select %p5262_p6, 1, 0 }
  0x5c   : > { %s6193_s27 = scalar_select %p5258_p1, 1, 0 }
  0x5d   : > { %p5268_p8 = por %p356_p2, %p53_p12  ;;  %s4094_s12 = sshll.u32 %s457_s18, 3 }
  0x5e   : > { %s4095_s14 = sshll.u32 %s5065_s16, 7  ;;  %s461_s5 = scalar_lea.vmem [#allocation2], %s4094_s12 }
  0x5f   : > { %s6195_s25 = scalar_select %p5268_p8, 1, 0 }
  0x60   : > { %s5276_s17 = scalar_lea.hbm %s6154_s0, %s4095_s14  ;;  %s468_s6 = sshll.u32 %s461_s5, 4  ;;  %s469_s6 = int_to_ptr.vmem [resolvable:$true] %s468_s6 }
  0x61   : > { %p5278_p11 = pnand %p4745_p5, %p49_p0  ;;  %s458_s7 = scalar_lea.sflag [#allocation3], %s457_s18 }
  0x62   : > { %s4961_s8 = scalar_lea.hbm %s5276_s17, 128  ;;  %s4966_s28 = scalar_lea.hbm %s6154_s0, 256 }
  0x63   : > { %p4962_p7 = scmp.ne.s32.totalorder %s5276_s17, %s4961_s8  ;;  %p4963_p9 = pneg %p5278_p11 }
  0x64   : > { %p4967_p13 = scmp.lt.s32.totalorder %s5276_s17, %s6154_s0  ;;  %p4968_p0 = scmp.lt.s32.totalorder %s4966_s28, %s4961_s8 }
  0x65   : > { %p4964_p10 = pnand %p4963_p9, %p4962_p7 }
  0x66   : > { %p4969_p4 = por %p4968_p0, %p4967_p13 }
  0x67   : > { %p4965_p12 = pneg %p4964_p10 }
  0x69   : > { %p4970_p2 = pnand %p4969_p4, %p4965_p12 }
  0x6b   : > { %4973 = shalt.err (!%p4970_p2)
}
  0x6c   : > { %s4974_s5 = scalar_lea.vmem %s469_s6, 128  ;;  %s5074_s18 = smov [#allocation2]  }
  0x6d   : > { %p4975_p5 = scmp.ne.s32.totalorder %s469_s6, %s4974_s5  ;;  %s4979_s24 = sshll.u32 %s5074_s18, 4  ;;  %s4980_s24 = int_to_ptr.vmem [resolvable:$false] %s4979_s24 }
  0x6e   : > { %s4981_s15 = scalar_lea.vmem %s4980_s24, 256  ;;  %p4982_p7 = scmp.lt.s32.totalorder %s469_s6, %s4980_s24 }
  0x6f   : > { %p4977_p8 = pnand %p4975_p5, %p4963_p9  ;;  %p4983_p10 = scmp.lt.s32.totalorder %s4981_s15, %s4974_s5 }
  0x71   : > { %p4978_p6 = pneg %p4977_p8  ;;  %p4984_p1 = por %p4983_p10, %p4982_p7 }
  0x73   : > { %p4985_p3 = pnand %p4984_p1, %p4978_p6 }
  0x75   : > { %4988 = shalt.err (!%p4985_p3)
}
  0x76   : > { %4735 = dma.hbm_to_vmem [thread:$0]  (!%p5278_p11), %s5276_s17, 128, %s469_s6, %s458_s7  }
  0x77   : > { %p6197_p12 = scmp.ne.s32.totalorder %s6183_s20, 0 }
  0x78   : > { %s5299_s8 = sand.u32 (!%p6197_p12), 1, %s5057_s30   ;;  %p6198_p1 = scmp.ne.s32.totalorder (!%p6197_p12), %s6193_s27, 0 }
  0x79   : > { %477 = sbr.rel (%p6197_p12) target bundleno = 1084 (0x43c), region = 76  ;;  %s4097_s9 = sshll.u32 (!%p6197_p12), %s5299_s8, 3 }
  0x7a   : > { %s480_s24 = scalar_lea.sflag (!%p6197_p12), [#allocation3], %s5299_s8  ;;  %s483_s15 = scalar_lea.vmem (!%p6197_p12), [#allocation2], %s4097_s9 }
  0x7e   : > { %5032 = dma.done.wait (%p6198_p1), %s480_s24, 128  }
  0x7f   : > { %5034 = vsyncadd (%p6198_p1), %s480_s24, 4294967168  ;;  %p6199_p3 = scmp.eq.s32.totalorder %s5174_s19, 0 }
  0x81   : > { %5036 = dma.done.wait (%p6199_p3), [#allocation6], 576   ;;  %p6200_p6 = pmov %p6199_p3 }
  0x82   : > { %p6201_p8 = pmov %p6199_p3 }
  0x83   : > { %5038 = vsyncadd (%p6200_p6), [#allocation6], 4294966720 }
  0x84   : > { %5040 = dma.done.wait (%p6201_p8), [#allocation9], 128   ;;  %p6202_p11 = pmov %p6199_p3 }
  0x85   : > { %p6203_p9 = pmov %p6199_p3 }
  0x86   : > { %5042 = vsyncadd (%p6202_p11), [#allocation9], 4294967168 }
  0x87   : > { %5044 = dma.done.wait (%p6203_p9), [#allocation12], 16   ;;  %p6204_p13 = pmov %p6199_p3 }
  0x88   : > { %v5075_v0 = vmov 0.0   ;;  %vm5076_vm0 = vmmov 0   ;;  %vm553_vm1 = vcmask 261120   ;;  %v552_v1 = vld [vmem:[%s6155_s1 + $0x18] sm:$0xff]  ;;  %v551_v2 = vld [vmem:[%s6155_s1 + $0x10] sm:$0xff]  ;;  %v550_v3 = vld [vmem:[%s6155_s1 + $0x8] sm:$0xff] }
  0x89   : > { %5046 = vsyncadd (%p6204_p13), [#allocation12], 4294967280  ;;  %4296 = vmatprep.subr.mxu0 %v5075_v0  ;;  %4307 = vmatprep.subr.mxu1 %v5075_v0  ;;  %v5336_v4 = vand.u32 4294901760, %v552_v1  ;;  %v5338_v5 = vand.u32 4294901760, %v551_v2  ;;  %v5340_v6 = vand.u32 4294901760, %v550_v3  ;;  %v549_v7 = vld [vmem:[%s6155_s1] sm:$0xff] }
  0x8a   : > { %4304 = vmatprep.mubr.msk.f32.mxu0 %vm5076_vm0, %v5075_v0  ;;  %4315 = vmatprep.mubr.msk.f32.mxu1 %vm5076_vm0, %v5075_v0  ;;  %v548_v8 = vld [vmem:[%s483_s15] sm:$0xff]  ;;  %v5345_v9 = vand.u32 4294901760, %v549_v7  ;;  %v1045_v32 = vld [vmem:[%s6156_s2 + $0x18] sm:$0xff]  ;;  %v1044_v34 = vld [vmem:[%s6156_s2 + $0x10] sm:$0xff]  ;;  %vm2522_vm2 = vcmask 1042432   ;;  %vm2532_vm3 = vcmask 1041408  }
  0x8b   : > { %v555_v10 = vsel %vm553_vm1, %v548_v8, 0  ;;  %4297 = vmatpush3.msra.mxu0 %v5336_v4  ;;  %v662_v11 = vsub.f32 %v552_v1, %v5336_v4  ;;  %v669_v13 = vsub.f32 %v551_v2, %v5338_v5  ;;  %v5354_v14 = vsub.f32 %v550_v3, %v5340_v6  ;;  %v1043_v35 = vld [vmem:[%s6156_s2 + $0x8] sm:$0xff]  ;;  %v1042_v38 = vld [vmem:[%s6156_s2] sm:$0xff]  ;;  %v1534_v56 = vld [vmem:[%s6157_s3 + $0x18] sm:$0xff]  ;;  %s6205_s17 = sld [smem:[#allocation26_spill]]  ;;  %s4113_s26 = sshll.u32 %s5174_s19, 7 }
  0x8c   : > { %v5350_v12 = vand.u32 4294901760, %v555_v10  ;;  %4298 = vmatprep.subr.mxu0 %v5075_v0  ;;  %v5358_v15 = vsub.f32 %v549_v7, %v5345_v9  ;;  %v5398_v33 = vand.u32 4294901760, %v1045_v32  ;;  %v5411_v36 = vand.u32 4294901760, %v1044_v34  ;;  %v1533_v58 = vld [vmem:[%s6157_s3 + $0x10] sm:$0xff]  ;;  %v1532_v59 = vld [vmem:[%s6157_s3 + $0x8] sm:$0xff]  ;;  %v1531_v62 = vld [vmem:[%s6157_s3] sm:$0xff] }
  0x8d   : > { %4299 = vmatpush3.msra.mxu0 %v5338_v5  ;;  %v663_v16 = vand.u32 4294901760, %v662_v11  ;;  %v670_v18 = vand.u32 4294901760, %v669_v13  ;;  %v677_v19 = vand.u32 4294901760, %v5354_v14  ;;  %v5422_v39 = vand.u32 4294901760, %v1043_v35  ;;  %s547_s14 = scalar_lea.vmem [#allocation13], %s4097_s9  ;;  %s6206_s5 = sld [smem:[#allocation27_spill]] }
  0x8e   : > { %v5362_v17 = vsub.f32 %v555_v10, %v5350_v12  ;;  %4300 = vmatprep.subr.mxu0 %v5075_v0  ;;  %v684_v20 = vand.u32 4294901760, %v5358_v15  ;;  %v5416_v37 = vsub.f32 %v1045_v32, %v5398_v33  ;;  %v5430_v40 = vsub.f32 %v1044_v34, %v5411_v36  ;;  %s3968_s22 = sshll.u32 %s547_s14, 4  ;;  %s3955_s24 = scalar_lea.sflag [#allocation4], %s5299_s8  ;;  %s3969_s22 = int_to_ptr.vmem [resolvable:$true] %s3968_s22 }
  0x8f   : > { %4301 = vmatpush3.msra.mxu0 %v5340_v6  ;;  %v664_v21 = vsub.f32 %v662_v11, %v663_v16  ;;  %v671_v23 = vsub.f32 %v669_v13, %v670_v18  ;;  %v678_v24 = vsub.f32 %v5354_v14, %v677_v19  ;;  %v5432_v41 = vand.u32 4294901760, %v1042_v38  ;;  %s4989_s15 = scalar_lea.vmem %s3969_s22, 128  ;;  %p6207_p4 = scmp.ne.s32.totalorder %s6194_s21, 0 }
  0x90   : > { %v5369_v22 = vand.u32 4294901760, %v5362_v17  ;;  %4302 = vmatprep.subr.mxu0 %v5075_v0  ;;  %v685_v28 = vsub.f32 %v5358_v15, %v684_v20  ;;  %v1152_v42 = vand.u32 4294901760, %v5416_v37  ;;  %v5439_v43 = vsub.f32 %v1043_v35, %v5422_v39  ;;  %p4990_p0 = scmp.ne.s32.totalorder %s3969_s22, %s4989_s15  ;;  %s5077_s19 = smov [#allocation13]  }
  0x91   : > { %4303 = vmatpush3.msra.mxu0 %v5345_v9  ;;  %v665_v25 = vand.u32 4294901760, %v664_v21  ;;  %v672_v27 = vand.u32 4294901760, %v671_v23  ;;  %v679_v30 = vand.u32 4294901760, %v678_v24  ;;  %v5448_v44 = vsub.f32 %v1042_v38, %v5432_v41  ;;  %v2022_v21 = vld [vmem:[%s6158_s4 + $0x10] sm:$0xff]  ;;  %v2021_v23 = vld [vmem:[%s6158_s4 + $0x8] sm:$0xff]  ;;  %s4993_s6 = sshll.u32 %s5077_s19, 4  ;;  %s4994_s6 = int_to_ptr.vmem [resolvable:$false] %s4993_s6 }
  0x92   : > { %v629_v26 = vsub.f32 %v5362_v17, %v5369_v22  ;;  %4318 = vmatprep.subr.mxu0 %v5075_v0  ;;  %v686_v31 = vand.u32 4294901760, %v685_v28  ;;  %v1159_v45 = vand.u32 4294901760, %v5430_v40  ;;  %v1153_v46 = vsub.f32 %v5416_v37, %v1152_v42  ;;  %p4991_p2 = pnand %p4990_p0, %p6207_p4  ;;  %s4995_s9 = scalar_lea.vmem %s4994_s6, 256 }
  0x93   : > { %4308 = vmatpush3.msra.mxu1 %v665_v25  ;;  %v1166_v47 = vand.u32 4294901760, %v5439_v43  ;;  %v1173_v49 = vand.u32 4294901760, %v5448_v44  ;;  %v5506_v57 = vand.u32 4294901760, %v1534_v56  ;;  %v5521_v60 = vand.u32 4294901760, %v1533_v58  ;;  %s3966_s18 = scalar_lea.hbm %s6206_s5, %s4113_s26  ;;  %p4996_p7 = scmp.lt.s32.totalorder %s3969_s22, %s4994_s6 }
  0x94   : > { %v5380_v29 = vand.u32 4294901760, %v629_v26  ;;  %4309 = vmatprep.subr.mxu1 %v5075_v0  ;;  %v1160_v48 = vsub.f32 %v5430_v40, %v1159_v45  ;;  %v1154_v50 = vand.u32 4294901760, %v1153_v46  ;;  %v5534_v63 = vand.u32 4294901760, %v1532_v59  ;;  %v2020_v26 = vld [vmem:[%s6158_s4] sm:$0xff]  ;;  %p4992_p5 = pneg %p4991_p2  ;;  %p4997_p10 = scmp.lt.s32.totalorder %s4995_s9, %s4989_s15 }
  0x95   : > { %4310 = vmatpush3.msra.mxu1 %v672_v27  ;;  %v1167_v51 = vsub.f32 %v5439_v43, %v1166_v47  ;;  %v1174_v53 = vsub.f32 %v5448_v44, %v1173_v49  ;;  %v5526_v61 = vsub.f32 %v1534_v56, %v5506_v57  ;;  %v5542_v1 = vsub.f32 %v1533_v58, %v5521_v60  ;;  %v2511_v46 = vld [vmem:[#allocation5 + $0x10] sm:$0xff] }
  0x96   : > { %4305 = vmatmul.mubr.f32.vlgmr.msra.gmra.mxu0 %v5380_v29  ;;  %4311 = vmatprep.subr.mxu1 %v5075_v0  ;;  %v1161_v52 = vand.u32 4294901760, %v1160_v48  ;;  %v5544_v2 = vand.u32 4294901760, %v1531_v62  ;;  %v5635_v24 = vand.u32 4294901760, %v2022_v21  ;;  %v5648_v27 = vand.u32 4294901760, %v2021_v23  ;;  %v2510_v48 = vld [vmem:[#allocation5 + $0x8] sm:$0xff]  ;;  %p4998_p12 = por %p4997_p10, %p4996_p7 }
  0x97   : > { %4319 = vmatpush3.msra.mxu0 %v662_v11  ;;  %4312 = vmatpush3.msra.mxu1 %v679_v30  ;;  %v1168_v54 = vand.u32 4294901760, %v1167_v51  ;;  %v1175_v55 = vand.u32 4294901760, %v1174_v53  ;;  %v1641_v3 = vand.u32 4294901760, %v5526_v61  ;;  %v5658_v30 = vand.u32 4294901760, %v2020_v26 }
  0x98   : > { %4320 = vmatprep.subr.mxu0 %v5075_v0  ;;  %4313 = vmatprep.subr.mxu1 %v5075_v0  ;;  %v5656_v28 = vsub.f32 %v2022_v21, %v5635_v24  ;;  %v5667_v32 = vsub.f32 %v2021_v23, %v5648_v27  ;;  %vm2542_vm4 = vcmask 1040384   ;;  %vm3225_vm5 = vcmask 64512   ;;  %p4999_p1 = pnand %p4998_p12, %p4992_p5 }
  0x99   : > { %4321 = vmatpush3.msra.mxu0 %v669_v13  ;;  %4314 = vmatpush3.msra.mxu1 %v686_v31  ;;  %v1642_v7 = vsub.f32 %v5526_v61, %v1641_v3  ;;  %vm3201_vm8 = vcmask 1043456   ;;  %vm3203_vm9 = vcmask 1044480   ;;  %vm3205_vm10 = vcmask 1045504  }
  0x9a   : > { %4322 = vmatprep.subr.mxu0 %v5075_v0  ;;  %4316 = vmatmul.mubr.f32.vlgmr.msra.gmra.mxu1 %v5350_v12  ;;  %v2137_v34 = vand.u32 4294901760, %v5656_v28  ;;  %vm3207_vm11 = vcmask 1046528  }
  0x9b   : > { %4323 = vmatpush3.msra.mxu0 %v5354_v14  ;;  %4329 = vmatprep.subr.mxu1 %v5075_v0  ;;  %v1643_v11 = vand.u32 4294901760, %v1642_v7 }
  0x9c   : > { %4324 = vmatprep.subr.mxu0 %v5075_v0  ;;  %4326 = vmatprep.mubr.msk.f32.mxu0 %vm5076_vm0, %v5075_v0 }
  0x9d   : > { %4325 = vmatpush3.msra.mxu0 %v5358_v15  ;;  %4330 = vmatpush3.msra.mxu1 %v5336_v4 }
  0x9e   : > { %4327 = vmatmul.mubr.f32.vlgmr.msra.gmra.mxu0 %v5362_v17  ;;  %4331 = vmatprep.subr.mxu1 %v5075_v0 }
  0x9f   : > { %4340 = vmatprep.subr.mxu0 %v5075_v0  ;;  %4332 = vmatpush3.msra.mxu1 %v5338_v5 }
  0xa0   : > { %4341 = vmatpush3.msra.mxu0 %v663_v16  ;;  %4333 = vmatprep.subr.mxu1 %v5075_v0 }
  0xa1   : > { %4342 = vmatprep.subr.mxu0 %v5075_v0  ;;  %4334 = vmatpush3.msra.mxu1 %v5340_v6 }
  0xa2   : > { %4343 = vmatpush3.msra.mxu0 %v670_v18  ;;  %4335 = vmatprep.subr.mxu1 %v5075_v0 }
  0xa3   : > { %4344 = vmatprep.subr.mxu0 %v5075_v0  ;;  %4336 = vmatpush3.msra.mxu1 %v5345_v9 }
  0xa4   : > { %4337 = vmatprep.mubr.msk.f32.mxu1 %vm5076_vm0, %v5075_v0  ;;  %4345 = vmatpush3.msra.mxu0 %v677_v19  ;;  %v2023_v19 = vld [vmem:[%s6158_s4 + $0x18] sm:$0xff] }
  0xa5   : > { %4338 = vmatmul.mubr.f32.vlgmr.msra.gmra.mxu1 %v5369_v22  ;;  %4346 = vmatprep.subr.mxu0 %v5075_v0 }
  0xa6   : > { %4351 = vmatprep.subr.mxu1 %v5075_v0  ;;  %4347 = vmatpush3.msra.mxu0 %v684_v20  ;;  %v5620_v20 = vand.u32 4294901760, %v2023_v19 }
  0xa7   : > { %4348 = vmatprep.mubr.msk.f32.mxu0 %vm5076_vm0, %v5075_v0  ;;  %4352 = vmatpush3.msra.mxu1 %v5336_v4  ;;  %v5553_v4 = vsub.f32 %v1532_v59, %v5534_v63 }
  0xa8   : > { %4349 = vmatmul.mubr.f32.vlgmr.msra.gmra.mxu0 %v5350_v12  ;;  %4353 = vmatprep.subr.mxu1 %v5075_v0  ;;  %v5640_v25 = vsub.f32 %v2023_v19, %v5620_v20 }
  0xa9   : > { %4362 = vmatprep.subr.mxu0 %v5075_v0  ;;  %4354 = vmatpush3.msra.mxu1 %v5338_v5  ;;  %v5562_v5 = vsub.f32 %v1531_v62, %v5544_v2  ;;  %v1655_v8 = vand.u32 4294901760, %v5553_v4 }
  0xaa   : > { %4363 = vmatpush3.msra.mxu0 %v5398_v33  ;;  %4355 = vmatprep.subr.mxu1 %v5075_v0  ;;  %v2130_v31 = vand.u32 4294901760, %v5640_v25 }
  0xab   : > { %4364 = vmatprep.subr.mxu0 %v5075_v0  ;;  %4356 = vmatpush3.msra.mxu1 %v5340_v6  ;;  %v1648_v6 = vand.u32 4294901760, %v5542_v1  ;;  %v1662_v10 = vand.u32 4294901760, %v5562_v5  ;;  %v1656_v13 = vsub.f32 %v5553_v4, %v1655_v8 }
  0xac   : > { %4365 = vmatpush3.msra.mxu0 %v5411_v36  ;;  %4357 = vmatprep.subr.mxu1 %v5075_v0  ;;  %v2131_v35 = vsub.f32 %v5640_v25, %v2130_v31 }
  0xad   : > { %4366 = vmatprep.subr.mxu0 %v5075_v0  ;;  %4358 = vmatpush3.msra.mxu1 %v5345_v9  ;;  %v1649_v9 = vsub.f32 %v5542_v1, %v1648_v6  ;;  %v1663_v15 = vsub.f32 %v5562_v5, %v1662_v10  ;;  %v1657_v16 = vand.u32 4294901760, %v1656_v13 }
  0xae   : > { %4359 = vmatprep.mubr.msk.f32.mxu1 %vm5076_vm0, %v5075_v0  ;;  %4367 = vmatpush3.msra.mxu0 %v5422_v39 }
  0xaf   : > { %4360 = vmatmul.mubr.f32.vlgmr.msra.gmra.mxu1 %v5350_v12  ;;  %4368 = vmatprep.subr.mxu0 %v5075_v0  ;;  %v1650_v14 = vand.u32 4294901760, %v1649_v9  ;;  %v1664_v18 = vand.u32 4294901760, %v1663_v15 }
  0xb0   : > { %4373 = vmatprep.subr.mxu1 %v5075_v0  ;;  %4369 = vmatpush3.msra.mxu0 %v5432_v41 }
  0xb1   : > { %4374 = vmatpush3.msra.mxu1 %v1154_v50  ;;  %4370 = vmatprep.mubr.msk.f32.mxu0 %vm5076_vm0, %v5075_v0  ;;  %v2509_v50 = vld [vmem:[#allocation5] sm:$0xff] }
  0xb2   : > { %4375 = vmatprep.subr.mxu1 %v5075_v0  ;;  %4384 = vmatprep.subr.mxu0 %v5075_v0 }
  0xb3   : > { %4371 = vmatmul.mubr.f32.vlgmr.msra.gmra.mxu0 %v5380_v29  ;;  %4376 = vmatpush3.msra.mxu1 %v1161_v52  ;;  %v5745_v52 = vand.u32 4294901760, %v2510_v48 }
  0xb4   : > { %4385 = vmatpush3.msra.mxu0 %v5416_v37  ;;  %4377 = vmatprep.subr.mxu1 %v5075_v0  ;;  %v2138_v37 = vsub.f32 %v5656_v28, %v2137_v34 }
  0xb5   : > { %4386 = vmatprep.subr.mxu0 %v5075_v0  ;;  %4378 = vmatpush3.msra.mxu1 %v1168_v54  ;;  %v5755_v54 = vand.u32 4294901760, %v2509_v50  ;;  %v5764_v56 = vsub.f32 %v2510_v48, %v5745_v52 }
  0xb6   : > { %4387 = vmatpush3.msra.mxu0 %v5430_v40  ;;  %4379 = vmatprep.subr.mxu1 %v5075_v0 }
  0xb7   : > { %4388 = vmatprep.subr.mxu0 %v5075_v0  ;;  %4380 = vmatpush3.msra.mxu1 %v1175_v55  ;;  %v5773_v58 = vsub.f32 %v2509_v50, %v5755_v54 }
  0xb8   : > { %4381 = vmatprep.mubr.msk.f32.mxu1 %vm5076_vm0, %v5075_v0  ;;  %4389 = vmatpush3.msra.mxu0 %v5439_v43 }
  0xb9   : > { %4382 = vmatmul.mubr.f32.vlgmr.msra.gmra.mxu1 %v5350_v12  ;;  %4390 = vmatprep.subr.mxu0 %v5075_v0  ;;  %v2773_v62 = vand.u32 4294901760, %v5773_v58 }
  0xba   : > { %4395 = vmatprep.subr.mxu1 %v5075_v0  ;;  %4391 = vmatpush3.msra.mxu0 %v5448_v44 }
  0xbb   : > { %4392 = vmatprep.mubr.msk.f32.mxu0 %vm5076_vm0, %v5075_v0  ;;  %4396 = vmatpush3.msra.mxu1 %v5398_v33 }
  0xbc   : > { %4393 = vmatmul.mubr.f32.vlgmr.msra.gmra.mxu0 %v5362_v17  ;;  %4397 = vmatprep.subr.mxu1 %v5075_v0 }
  0xbd   : > { %4406 = vmatprep.subr.mxu0 %v5075_v0  ;;  %4398 = vmatpush3.msra.mxu1 %v5411_v36 }
  0xbe   : > { %4407 = vmatpush3.msra.mxu0 %v1152_v42  ;;  %4399 = vmatprep.subr.mxu1 %v5075_v0 }
  0xbf   : > { %4408 = vmatprep.subr.mxu0 %v5075_v0  ;;  %4400 = vmatpush3.msra.mxu1 %v5422_v39 }
  0xc0   : > { %4409 = vmatpush3.msra.mxu0 %v1159_v45  ;;  %4401 = vmatprep.subr.mxu1 %v5075_v0  ;;  %v2512_v45 = vld [vmem:[#allocation5 + $0x18] sm:$0xff] }
  0xc1   : > { %4410 = vmatprep.subr.mxu0 %v5075_v0  ;;  %4402 = vmatpush3.msra.mxu1 %v5432_v41 }
  0xc2   : > { %4403 = vmatprep.mubr.msk.f32.mxu1 %vm5076_vm0, %v5075_v0  ;;  %4411 = vmatpush3.msra.mxu0 %v1166_v47  ;;  %v5728_v47 = vand.u32 4294901760, %v2512_v45 }
  0xc3   : > { %4404 = vmatmul.mubr.f32.vlgmr.msra.gmra.mxu1 %v5369_v22  ;;  %4412 = vmatprep.subr.mxu0 %v5075_v0 }
  0xc4   : > { %4417 = vmatprep.subr.mxu1 %v5075_v0  ;;  %4413 = vmatpush3.msra.mxu0 %v1173_v49  ;;  %v5735_v49 = vand.u32 4294901760, %v2511_v46  ;;  %v5743_v51 = vsub.f32 %v2512_v45, %v5728_v47 }
  0xc5   : > { %4414 = vmatprep.mubr.msk.f32.mxu0 %vm5076_vm0, %v5075_v0  ;;  %4418 = vmatpush3.msra.mxu1 %v5398_v33  ;;  %v5676_v33 = vsub.f32 %v2020_v26, %v5658_v30 }
  0xc6   : > { %4415 = vmatmul.mubr.f32.vlgmr.msra.gmra.mxu0 %v5350_v12  ;;  %4419 = vmatprep.subr.mxu1 %v5075_v0  ;;  %v5753_v53 = vsub.f32 %v2511_v46, %v5735_v49  ;;  %v2752_v55 = vand.u32 4294901760, %v5743_v51 }
  0xc7   : > { %4428 = vmatprep.subr.mxu0 %v5075_v0  ;;  %4420 = vmatpush3.msra.mxu1 %v5411_v36  ;;  %v2144_v36 = vand.u32 4294901760, %v5667_v32  ;;  %v2151_v38 = vand.u32 4294901760, %v5676_v33 }
  0xc8   : > { %4429 = vmatpush3.msra.mxu0 %v5506_v57  ;;  %4421 = vmatprep.subr.mxu1 %v5075_v0  ;;  %v2753_v59 = vsub.f32 %v5743_v51, %v2752_v55 }
  0xc9   : > { %4430 = vmatprep.subr.mxu0 %v5075_v0  ;;  %4422 = vmatpush3.msra.mxu1 %v5422_v39  ;;  %v2132_v39 = vand.u32 4294901760, %v2131_v35  ;;  %v2145_v40 = vsub.f32 %v5667_v32, %v2144_v36  ;;  %v2152_v42 = vsub.f32 %v5676_v33, %v2151_v38 }
  0xca   : > { %4431 = vmatpush3.msra.mxu0 %v5521_v60  ;;  %4423 = vmatprep.subr.mxu1 %v5075_v0 }
  0xcb   : > { %4432 = vmatprep.subr.mxu0 %v5075_v0  ;;  %4424 = vmatpush3.msra.mxu1 %v5432_v41  ;;  %v2139_v41 = vand.u32 4294901760, %v2138_v37  ;;  %v2146_v43 = vand.u32 4294901760, %v2145_v40  ;;  %v2153_v44 = vand.u32 4294901760, %v2152_v42 }
  0xcc   : > { %4425 = vmatprep.mubr.msk.f32.mxu1 %vm5076_vm0, %v5075_v0  ;;  %4433 = vmatpush3.msra.mxu0 %v5534_v63 }
  0xcd   : > { %4426 = vmatmul.mubr.f32.vlgmr.msra.gmra.mxu1 %v5350_v12  ;;  %4434 = vmatprep.subr.mxu0 %v5075_v0 }
  0xce   : > { %4439 = vmatprep.subr.mxu1 %v5075_v0  ;;  %4435 = vmatpush3.msra.mxu0 %v5544_v2 }
  0xcf   : > { %4440 = vmatpush3.msra.mxu1 %v1643_v11  ;;  %4436 = vmatprep.mubr.msk.f32.mxu0 %vm5076_vm0, %v5075_v0 }
  0xd0   : > { %4441 = vmatprep.subr.mxu1 %v5075_v0  ;;  %4450 = vmatprep.subr.mxu0 %v5075_v0 }
  0xd1   : > { %4437 = vmatmul.mubr.f32.vlgmr.msra.gmra.mxu0 %v5380_v29  ;;  %4442 = vmatpush3.msra.mxu1 %v1650_v14 }
  0xd2   : > { %4451 = vmatpush3.msra.mxu0 %v5526_v61  ;;  %4443 = vmatprep.subr.mxu1 %v5075_v0 }
  0xd3   : > { %4452 = vmatprep.subr.mxu0 %v5075_v0  ;;  %4444 = vmatpush3.msra.mxu1 %v1657_v16 }
  0xd4   : > { %4453 = vmatpush3.msra.mxu0 %v5542_v1  ;;  %4445 = vmatprep.subr.mxu1 %v5075_v0 }
  0xd5   : > { %4454 = vmatprep.subr.mxu0 %v5075_v0  ;;  %4446 = vmatpush3.msra.mxu1 %v1664_v18 }
  0xd6   : > { %4447 = vmatprep.mubr.msk.f32.mxu1 %vm5076_vm0, %v5075_v0  ;;  %4455 = vmatpush3.msra.mxu0 %v5553_v4 }
  0xd7   : > { %4448 = vmatmul.mubr.f32.vlgmr.msra.gmra.mxu1 %v5350_v12  ;;  %4456 = vmatprep.subr.mxu0 %v5075_v0 }
  0xd8   : > { %4461 = vmatprep.subr.mxu1 %v5075_v0  ;;  %4457 = vmatpush3.msra.mxu0 %v5562_v5 }
  0xd9   : > { %4458 = vmatprep.mubr.msk.f32.mxu0 %vm5076_vm0, %v5075_v0  ;;  %4462 = vmatpush3.msra.mxu1 %v5506_v57 }
  0xda   : > { %4459 = vmatmul.mubr.f32.vlgmr.msra.gmra.mxu0 %v5362_v17  ;;  %4463 = vmatprep.subr.mxu1 %v5075_v0 }
  0xdb   : > { %4472 = vmatprep.subr.mxu0 %v5075_v0  ;;  %4464 = vmatpush3.msra.mxu1 %v5521_v60 }
  0xdc   : > { %4473 = vmatpush3.msra.mxu0 %v1641_v3  ;;  %4465 = vmatprep.subr.mxu1 %v5075_v0  ;;  %v2774_v3 = vsub.f32 %v5773_v58, %v2773_v62 }
  0xdd   : > { %4474 = vmatprep.subr.mxu0 %v5075_v0  ;;  %4466 = vmatpush3.msra.mxu1 %v5534_v63 }
  0xde   : > { %4475 = vmatpush3.msra.mxu0 %v1648_v6  ;;  %4467 = vmatprep.subr.mxu1 %v5075_v0  ;;  %v2775_v5 = vand.u32 4294901760, %v2774_v3 }
  0xdf   : > { %4476 = vmatprep.subr.mxu0 %v5075_v0  ;;  %4468 = vmatpush3.msra.mxu1 %v5544_v2 }
  0xe0   : > { %4469 = vmatprep.mubr.msk.f32.mxu1 %vm5076_vm0, %v5075_v0  ;;  %4477 = vmatpush3.msra.mxu0 %v1655_v8 }
  0xe1   : > { %4470 = vmatmul.mubr.f32.vlgmr.msra.gmra.mxu1 %v5369_v22  ;;  %4478 = vmatprep.subr.mxu0 %v5075_v0 }
  0xe2   : > { %4483 = vmatprep.subr.mxu1 %v5075_v0  ;;  %4479 = vmatpush3.msra.mxu0 %v1662_v10 }
  0xe3   : > { %4480 = vmatprep.mubr.msk.f32.mxu0 %vm5076_vm0, %v5075_v0  ;;  %4484 = vmatpush3.msra.mxu1 %v5506_v57  ;;  %v2759_v57 = vand.u32 4294901760, %v5753_v53 }
  0xe4   : > { %4481 = vmatmul.mubr.f32.vlgmr.msra.gmra.mxu0 %v5350_v12  ;;  %4485 = vmatprep.subr.mxu1 %v5075_v0 }
  0xe5   : > { %4494 = vmatprep.subr.mxu0 %v5075_v0  ;;  %4486 = vmatpush3.msra.mxu1 %v5521_v60  ;;  %v2766_v60 = vand.u32 4294901760, %v5764_v56  ;;  %v2760_v61 = vsub.f32 %v5753_v53, %v2759_v57 }
  0xe6   : > { %4495 = vmatpush3.msra.mxu0 %v5620_v20  ;;  %4487 = vmatprep.subr.mxu1 %v5075_v0 }
  0xe7   : > { %4496 = vmatprep.subr.mxu0 %v5075_v0  ;;  %4488 = vmatpush3.msra.mxu1 %v5534_v63  ;;  %v2754_v63 = vand.u32 4294901760, %v2753_v59  ;;  %v2767_v1 = vsub.f32 %v5764_v56, %v2766_v60 }
  0xe8   : > { %4497 = vmatpush3.msra.mxu0 %v5635_v24  ;;  %4489 = vmatprep.subr.mxu1 %v5075_v0 }
  0xe9   : > { %4498 = vmatprep.subr.mxu0 %v5075_v0  ;;  %4490 = vmatpush3.msra.mxu1 %v5544_v2  ;;  %v2761_v2 = vand.u32 4294901760, %v2760_v61  ;;  %v2768_v4 = vand.u32 4294901760, %v2767_v1 }
  0xea   : > { %4491 = vmatprep.mubr.msk.f32.mxu1 %vm5076_vm0, %v5075_v0  ;;  %4499 = vmatpush3.msra.mxu0 %v5648_v27 }
  0xeb   : > { %4492 = vmatmul.mubr.f32.vlgmr.msra.gmra.mxu1 %v5350_v12  ;;  %4500 = vmatprep.subr.mxu0 %v5075_v0 }
  0xec   : > { %4505 = vmatprep.subr.mxu1 %v5075_v0  ;;  %4501 = vmatpush3.msra.mxu0 %v5658_v30 }
  0xed   : > { %4506 = vmatpush3.msra.mxu1 %v2132_v39  ;;  %4502 = vmatprep.mubr.msk.f32.mxu0 %vm5076_vm0, %v5075_v0 }
  0xee   : > { %4507 = vmatprep.subr.mxu1 %v5075_v0  ;;  %4516 = vmatprep.subr.mxu0 %v5075_v0 }
  0xef   : > { %4503 = vmatmul.mubr.f32.vlgmr.msra.gmra.mxu0 %v5380_v29  ;;  %4508 = vmatpush3.msra.mxu1 %v2139_v41 }
  0xf0   : > { %4517 = vmatpush3.msra.mxu0 %v5640_v25  ;;  %4509 = vmatprep.subr.mxu1 %v5075_v0 }
  0xf1   : > { %4518 = vmatprep.subr.mxu0 %v5075_v0  ;;  %4510 = vmatpush3.msra.mxu1 %v2146_v43 }
  0xf2   : > { %4519 = vmatpush3.msra.mxu0 %v5656_v28  ;;  %4511 = vmatprep.subr.mxu1 %v5075_v0 }
  0xf3   : > { %4520 = vmatprep.subr.mxu0 %v5075_v0  ;;  %4512 = vmatpush3.msra.mxu1 %v2153_v44 }
  0xf4   : > { %4513 = vmatprep.mubr.msk.f32.mxu1 %vm5076_vm0, %v5075_v0  ;;  %4521 = vmatpush3.msra.mxu0 %v5667_v32 }
  0xf5   : > { %4514 = vmatmul.mubr.f32.vlgmr.msra.gmra.mxu1 %v5350_v12  ;;  %4522 = vmatprep.subr.mxu0 %v5075_v0 }
  0xf6   : > { %4527 = vmatprep.subr.mxu1 %v5075_v0  ;;  %4523 = vmatpush3.msra.mxu0 %v5676_v33 }
  0xf7   : > { %4524 = vmatprep.mubr.msk.f32.mxu0 %vm5076_vm0, %v5075_v0  ;;  %4528 = vmatpush3.msra.mxu1 %v5620_v20 }
  0xf8   : > { %4525 = vmatmul.mubr.f32.vlgmr.msra.gmra.mxu0 %v5362_v17  ;;  %4529 = vmatprep.subr.mxu1 %v5075_v0 }
  0xf9   : > { %4538 = vmatprep.subr.mxu0 %v5075_v0  ;;  %4530 = vmatpush3.msra.mxu1 %v5635_v24 }
  0xfa   : > { %4539 = vmatpush3.msra.mxu0 %v2130_v31  ;;  %4531 = vmatprep.subr.mxu1 %v5075_v0 }
  0xfb   : > { %4540 = vmatprep.subr.mxu0 %v5075_v0  ;;  %4532 = vmatpush3.msra.mxu1 %v5648_v27 }
  0xfc   : > { %4541 = vmatpush3.msra.mxu0 %v2137_v34  ;;  %4533 = vmatprep.subr.mxu1 %v5075_v0 }
  0xfd   : > { %4542 = vmatprep.subr.mxu0 %v5075_v0  ;;  %4534 = vmatpush3.msra.mxu1 %v5658_v30 }
  0xfe   : > { %4535 = vmatprep.mubr.msk.f32.mxu1 %vm5076_vm0, %v5075_v0  ;;  %4543 = vmatpush3.msra.mxu0 %v2144_v36 }
  0xff   : > { %4536 = vmatmul.mubr.f32.vlgmr.msra.gmra.mxu1 %v5369_v22  ;;  %4544 = vmatprep.subr.mxu0 %v5075_v0 }
 0x100   : > { %4549 = vmatprep.subr.mxu1 %v5075_v0  ;;  %4545 = vmatpush3.msra.mxu0 %v2151_v38 }
 0x101   : > { %4546 = vmatprep.mubr.msk.f32.mxu0 %vm5076_vm0, %v5075_v0  ;;  %4550 = vmatpush3.msra.mxu1 %v5620_v20 }
 0x102   : > { %4547 = vmatmul.mubr.f32.vlgmr.msra.gmra.mxu0 %v5350_v12  ;;  %4551 = vmatprep.subr.mxu1 %v5075_v0 }
 0x103   : > { %4560 = vmatprep.subr.mxu0 %v5075_v0  ;;  %4552 = vmatpush3.msra.mxu1 %v5635_v24 }
 0x104   : > { %4557 = vmatprep.mubr.msk.f32.mxu1 %vm5076_vm0, %v5075_v0  ;;  %4553 = vmatprep.subr.mxu1 %v5075_v0 }
 0x105   : > { %4561 = vmatpush3.msra.mxu0 %v5728_v47  ;;  %4554 = vmatpush3.msra.mxu1 %v5648_v27 }
 0x106   : > { %4562 = vmatprep.subr.mxu0 %v5075_v0  ;;  %4555 = vmatprep.subr.mxu1 %v5075_v0 }
 0x107   : > { %4563 = vmatpush3.msra.mxu0 %v5735_v49  ;;  %4556 = vmatpush3.msra.mxu1 %v5658_v30 }
 0x108   : > { %4564 = vmatprep.subr.mxu0 %v5075_v0  ;;  %4558 = vmatmul.mubr.f32.vlgmr.msra.gmra.mxu1 %v5350_v12 }
 0x109   : > { %4571 = vmatprep.subr.mxu1 %v5075_v0  ;;  %4565 = vmatpush3.msra.mxu0 %v5745_v52 }
 0x10a   : > { %4572 = vmatpush3.msra.mxu1 %v2754_v63  ;;  %4566 = vmatprep.subr.mxu0 %v5075_v0 }
 0x10b   : > { %4573 = vmatprep.subr.mxu1 %v5075_v0  ;;  %4567 = vmatpush3.msra.mxu0 %v5755_v54 }
 0x10c   : > { %4574 = vmatpush3.msra.mxu1 %v2761_v2  ;;  %4568 = vmatprep.mubr.msk.f32.mxu0 %vm5076_vm0, %v5075_v0 }
 0x10d   : > { %4575 = vmatprep.subr.mxu1 %v5075_v0  ;;  %4582 = vmatprep.subr.mxu0 %v5075_v0 }
 0x10e   : > { %4576 = vmatpush3.msra.mxu1 %v2768_v4  ;;  %4569 = vmatmul.mubr.f32.vlgmr.msra.gmra.mxu0 %v5380_v29  ;;  %v2557_v4 = vld [vmem:[#allocation8] sm:$0xf] }
 0x10f   : > { %4577 = vmatprep.subr.mxu1 %v5075_v0  ;;  %4583 = vmatpush3.msra.mxu0 %v5743_v51 }
 0x110   : > { %4578 = vmatpush3.msra.mxu1 %v2775_v5  ;;  %4579 = vmatprep.mubr.msk.f32.mxu1 %vm5076_vm0, %v5075_v0 }
 0x111   : > { %4584 = vmatprep.subr.mxu0 %v5075_v0  ;;  %4593 = vmatprep.subr.mxu1 %v5075_v0 }
 0x112   : > { %4580 = vmatmul.mubr.f32.vlgmr.msra.gmra.mxu1 %v5350_v12  ;;  %4585 = vmatpush3.msra.mxu0 %v5753_v53 }
 0x113   : > { %4594 = vmatpush3.msra.mxu1 %v5728_v47  ;;  %4586 = vmatprep.subr.mxu0 %v5075_v0 }
 0x114   : > { %4595 = vmatprep.subr.mxu1 %v5075_v0  ;;  %4587 = vmatpush3.msra.mxu0 %v5764_v56 }
 0x115   : > { %4596 = vmatpush3.msra.mxu1 %v5735_v49  ;;  %4588 = vmatprep.subr.mxu0 %v5075_v0 }
 0x116   : > { %4597 = vmatprep.subr.mxu1 %v5075_v0  ;;  %4589 = vmatpush3.msra.mxu0 %v5773_v58  ;;  %v2514_v58 = vlaneseq }
 0x117   : > { %4598 = vmatpush3.msra.mxu1 %v5745_v52  ;;  %4590 = vmatprep.mubr.msk.f32.mxu0 %vm5076_vm0, %v5075_v0 }
 0x118   : > { %4599 = vmatprep.subr.mxu1 %v5075_v0  ;;  %4604 = vmatprep.subr.mxu0 %v5075_v0 }
 0x119   : > { %4591 = vmatmul.mubr.f32.vlgmr.msra.gmra.mxu0 %v5362_v17  ;;  %4600 = vmatpush3.msra.mxu1 %v5755_v54 }
 0x11a   : > { %4605 = vmatpush3.msra.mxu0 %v2752_v55  ;;  %4601 = vmatprep.mubr.msk.f32.mxu1 %vm5076_vm0, %v5075_v0 }
 0x11b   : > { %4606 = vmatprep.subr.mxu0 %v5075_v0  ;;  %4615 = vmatprep.subr.mxu1 %v5075_v0 }
 0x11c   : > { %4602 = vmatmul.mubr.f32.vlgmr.msra.gmra.mxu1 %v5369_v22  ;;  %4607 = vmatpush3.msra.mxu0 %v2759_v57 }
 0x11d   : > { %4616 = vmatpush3.msra.mxu1 %v5728_v47  ;;  %4608 = vmatprep.subr.mxu0 %v5075_v0 }
 0x11e   : > { %4617 = vmatprep.subr.mxu1 %v5075_v0  ;;  %4609 = vmatpush3.msra.mxu0 %v2766_v60 }
 0x11f   : > { %4618 = vmatpush3.msra.mxu1 %v5735_v49  ;;  %4610 = vmatprep.subr.mxu0 %v5075_v0 }
 0x120   : > { %4619 = vmatprep.subr.mxu1 %v5075_v0  ;;  %4611 = vmatpush3.msra.mxu0 %v2773_v62  ;;  %v5876_v62 = vshrl.u32 %v2514_v58, 7 }
 0x121   : > { %4612 = vmatprep.mubr.msk.f32.mxu0 %vm5076_vm0, %v5075_v0  ;;  %4620 = vmatpush3.msra.mxu1 %v5745_v52 }
 0x122   : > { %4613 = vmatmul.mubr.f32.vlgmr.msra.gmra.mxu0 %v5350_v12  ;;  %4621 = vmatprep.subr.mxu1 %v5075_v0  ;;  %v5879_v2 = vsub.s32 0, %v5876_v62  ;;  %v5882_v5 = vsub.s32 3, %v5876_v62  ;;  %vm3269_vm12 = vcmp.le.s32.totalorder %v5876_v62, 2  ;;  %vm3216_vm13 = vcmp.le.s32.totalorder %v5876_v62, 0 }
 0x123   : > { %4623 = vmatprep.mubr.msk.f32.mxu1 %vm5076_vm0, %v5075_v0  ;;  %4622 = vmatpush3.msra.mxu1 %v5755_v54  ;;  %vm3295_vm14 = vcmp.le.s32.totalorder %v5876_v62, 3  ;;  %vm3243_vm15 = vcmp.le.s32.totalorder %v5876_v62, 1 }
 0x124   : > { %4626 = vmatprep.subr.mxu0 %v5075_v0  ;;  %4624 = vmatmul.mubr.f32.vlgmr.msra.gmra.mxu1 %v5350_v12 }
 0x125   : > { %4637 = vmatprep.subr.mxu1 %v5075_v0  ;;  %4645 = vmatprep.mubr.msk.f32.mxu1 %vm5076_vm0, %v5075_v0 }
 0x126   : > { %4634 = vmatprep.mubr.msk.f32.mxu0 %vm5076_vm0, %v5075_v0 }
 0x156   : > { %v632_v17 = vpop.f32.mrf.mxu0 }
 0x158   : > { %v4306_v22 = vpop.f32.mrf.mxu0 }
 0x15a   : > { %v723_v29 = vpop.f32.mrf.mxu1 }
 0x15b   : > { %v724_v6 = vadd.f32 %v723_v29, %v632_v17  ;;  %v2570_v17 = vrot.slane %v2557_v4, %v5879_v2  ;;  %v2561_v29 = vrot.slane %v2557_v4, %v5882_v5 }
 0x15c   : > { %v4317_v7 = vpop.f32.mrf.mxu1 }
 0x15e   : > { %v803_v8 = vpop.f32.mrf.mxu0 }
 0x15f   : > { %v804_v9 = vadd.f32 %v803_v8, %v724_v6 }
 0x160   : > { %v4328_v10 = vpop.f32.mrf.mxu0 }
 0x165   : > { %v880_v11 = vpop.f32.mrf.mxu1 }
 0x166   : > { %v881_v13 = vadd.f32 %v880_v11, %v804_v9  ;;  %v5888_v9 = vsub.s32 1, %v5876_v62 }
 0x167   : > { %v4339_v14 = vpop.f32.mrf.mxu1 }
 0x168   : > { %v963_v12 = vpop.f32.mrf.mxu0  ;;  %v2579_v14 = vrot.slane %v2557_v4, %v5888_v9 }
 0x169   : > { %v964_v15 = vadd.f32 %v963_v12, %v881_v13 }
 0x16a   : > { %v4350_v16 = vpop.f32.mrf.mxu0 }
 0x16f   : > { %v1038_v18 = vpop.f32.mrf.mxu1 }
 0x170   : > { %v5872_v19 = vadd.f32 %v1038_v18, %v964_v15 }
 0x171   : > { %v4361_v20 = vpop.f32.mrf.mxu1 }
 0x172   : > { %v5893_v20 = vsub.s32 2, %v5876_v62 }
 0x173   : > { %v1121_v21 = vpop.f32.mrf.mxu0 }
 0x175   : > { %v4372_v23 = vpop.f32.mrf.mxu0 }
 0x179   : > { %v1212_v24 = vpop.f32.mrf.mxu1 }
 0x17a   : > { %v1213_v25 = vadd.f32 %v1212_v24, %v1121_v21 }
 0x17b   : > { %v4383_v26 = vpop.f32.mrf.mxu1 }
 0x17c   : > { %v1292_v27 = vpop.f32.mrf.mxu0  ;;  %v2588_v26 = vrot.slane %v2557_v4, %v5893_v20 }
 0x17d   : > { %v1293_v28 = vadd.f32 %v1292_v27, %v1213_v25 }
 0x17e   : > { %v4394_v30 = vpop.f32.mrf.mxu0 }
 0x183   : > { %v1369_v31 = vpop.f32.mrf.mxu1 }
 0x184   : > { %v1370_v32 = vadd.f32 %v1369_v31, %v1293_v28  ;;  %v2598_v31 = vld [vmem:[#allocation10] sm:$0xf] }
 0x185   : > { %v4405_v33 = vpop.f32.mrf.mxu1 }
 0x186   : > { %v1452_v34 = vpop.f32.mrf.mxu0 }
 0x187   : > { %v1453_v35 = vadd.f32 %v1452_v34, %v1370_v32 }
 0x188   : > { %v4416_v36 = vpop.f32.mrf.mxu0 }
 0x189   : > { %v2602_v36 = vrot.slane %v2598_v31, %v5882_v5 }
 0x18d   : > { %v1527_v37 = vpop.f32.mrf.mxu1 }
 0x18e   : > { %v5874_v38 = vadd.f32 %v1527_v37, %v1453_v35  ;;  %v2611_v37 = vrot.slane %v2598_v31, %v5879_v2 }
 0x18f   : > { %v4427_v39 = vpop.f32.mrf.mxu1 }
 0x190   : > { %v2520_v35 = vrot.slane %v5874_v38, 5 }
 0x191   : > { %v1610_v40 = vpop.f32.mrf.mxu0 }
 0x193   : > { %v4438_v41 = vpop.f32.mrf.mxu0 }
 0x197   : > { %v1701_v42 = vpop.f32.mrf.mxu1 }
 0x198   : > { %v1702_v50 = vadd.f32 %v1701_v42, %v1610_v40 }
 0x199   : > { %v4449_v43 = vpop.f32.mrf.mxu1 }
 0x19a   : > { %v1781_v44 = vpop.f32.mrf.mxu0 }
 0x19b   : > { %v1782_v52 = vadd.f32 %v1781_v44, %v1702_v50  ;;  %v2620_v44 = vrot.slane %v2598_v31, %v5888_v9 }
 0x19c   : > { %v4460_v45 = vpop.f32.mrf.mxu0 }
 0x19d   : > { %v4107_v45 = vld [vmem:[%s6164_s10] ss:$0 sm:$0xff] }
 0x1a1   : > { %v1858_v46 = vpop.f32.mrf.mxu1 }
 0x1a2   : > { %v1859_v54 = vadd.f32 %v1858_v46, %v1782_v52  ;;  %v2513_v46 = vld [vmem:[#allocation7] sm:$0xf]  ;;  %v2629_v52 = vrot.slane %v2598_v31, %v5893_v20 }
 0x1a3   : > { %v4471_v47 = vpop.f32.mrf.mxu1  ;;  %v2517_v58 = vrot.slane %v2513_v46, %v5882_v5 }
 0x1a4   : > { %v1941_v48 = vpop.f32.mrf.mxu0 }
 0x1a5   : > { %v1942_v57 = vadd.f32 %v1941_v48, %v1859_v54  ;;  %v2523_v54 = vsel %vm2522_vm2, 0.0, %v2520_v35 }
 0x1a6   : > { %v4482_v49 = vpop.f32.mrf.mxu0 }
 0x1a7   : > { %v2527_v49 = vrot.slane %v2513_v46, %v5879_v2 }
 0x1ab   : > { %v2016_v51 = vpop.f32.mrf.mxu1 }
 0x1ac   : > { %v2017_v59 = vadd.f32 %v2016_v51, %v1942_v57 }
 0x1ad   : > { %v4493_v53 = vpop.f32.mrf.mxu1 }
 0x1ae   : > { %v2564_v1 = vrot.slane %v2017_v59, 5  ;;  %v2573_v7 = vrot.slane %v2017_v59, 6  ;;  %v2562_v13 = vmul.f32 %v2561_v29, %v2017_v59  ;;  %v2582_v18 = vrot.slane %v2017_v59, 7 }
 0x1af   : > { %v2099_v55 = vpop.f32.mrf.mxu0 }
 0x1b0   : > { %v2566_v22 = vsel %vm2522_vm2, 0.0, %v2564_v1  ;;  %v2575_v16 = vsel %vm2532_vm3, 0.0, %v2573_v7  ;;  %v2584_v27 = vsel %vm2542_vm4, 0.0, %v2582_v18  ;;  %v2537_v7 = vrot.slane %v2513_v46, %v5888_v9 }
 0x1b1   : > { %v4504_v56 = vpop.f32.mrf.mxu0  ;;  %v2571_v10 = vmul.f32 %v2570_v17, %v2566_v22  ;;  %v2580_v25 = vmul.f32 %v2579_v14, %v2575_v16  ;;  %v2589_v33 = vmul.f32 %v2588_v26, %v2584_v27 }
 0x1b3   : > { %v2572_v21 = vadd.f32 %v2571_v10, %v2562_v13 }
 0x1b5   : > { %v2190_v60 = vpop.f32.mrf.mxu1  ;;  %v2581_v28 = vadd.f32 %v2580_v25, %v2572_v21 }
 0x1b6   : > { %v2191_v6 = vadd.f32 %v2190_v60, %v2099_v55 }
 0x1b7   : > { %v4515_v61 = vpop.f32.mrf.mxu1  ;;  %v5900_v40 = vadd.f32 %v2589_v33, %v2581_v28 }
 0x1b8   : > { %v2270_v63 = vpop.f32.mrf.mxu0 }
 0x1b9   : > { %v2271_v12 = vadd.f32 %v2270_v63, %v2191_v6  ;;  %v4105_v55 = vmul.f32 -1.442695, %v5900_v40  ;;  %v2530_v63 = vrot.slane %v5874_v38, 6  ;;  %v2518_v6 = vmul.f32 %v2517_v58, %v5874_v38 }
 0x1ba   : > { %v4526_v3 = vpop.f32.mrf.mxu0  ;;  %v3318_v58 = vsub.s32 4, %v5876_v62 }
 0x1bb   : > { %v2528_v3 = vmul.f32 %v2527_v49, %v2523_v54  ;;  %4793 = vpow2.f32 %v4105_v55  ;;  %v2533_v10 = vsel %vm2532_vm3, 0.0, %v2530_v63  ;;  %v3396_v63 = vsub.s32 7, %v5876_v62 }
 0x1bd   : > { %v2529_v13 = vadd.f32 %v2528_v3, %v2518_v6 }
 0x1bf   : > { %v2347_v8 = vpop.f32.mrf.mxu1 }
 0x1c0   : > { %v2348_v23 = vadd.f32 %v2347_v8, %v2271_v12  ;;  %v2538_v12 = vmul.f32 %v2537_v7, %v2533_v10 }
 0x1c1   : > { %v4537_v11 = vpop.f32.mrf.mxu1 }
 0x1c2   : > { %v2430_v15 = vpop.f32.mrf.mxu0  ;;  %v2540_v11 = vrot.slane %v5874_v38, 7 }
 0x1c3   : > { %v2431_v30 = vadd.f32 %v2430_v15, %v2348_v23  ;;  %v2547_v15 = vrot.slane %v2513_v46, %v5893_v20 }
 0x1c4   : > { %v4548_v24 = vpop.f32.mrf.mxu0  ;;  %v2543_v18 = vsel %vm2542_vm4, 0.0, %v2540_v11 }
 0x1c5   : > { %v2539_v24 = vadd.f32 %v2538_v12, %v2529_v13  ;;  %v2548_v26 = vmul.f32 %v2547_v15, %v2543_v18 }
 0x1c8   : > { %v2505_v32 = vpop.f32.mrf.mxu1  ;;  %v4794_v31 = vpop.eup %4793 }
 0x1c9   : > { %v2506_v34 = vadd.f32 %v2505_v32, %v2431_v30  ;;  %v5921_v30 = vadd.f32 %v2548_v26, %v2539_v24 }
 0x1ca   : > { %v4559_v39 = vpop.f32.mrf.mxu1 }
 0x1cb   : > { %v2605_v41 = vrot.slane %v2506_v34, 5  ;;  %v2614_v42 = vrot.slane %v2506_v34, 6  ;;  %v2623_v43 = vrot.slane %v2506_v34, 7  ;;  %v2603_v50 = vmul.f32 %v2602_v36, %v2506_v34 }
 0x1cc   : > { %v4104_v33 = vmul.f32 -1.442695, %v5921_v30  ;;  %v2594_v34 = vadd.f32 1.0, %v4794_v31  ;;  %v4108_v31 = vld [vmem:[#allocation11] ss:$0 sm:$0xff] }
 0x1cd   : > { %v2607_v47 = vsel %vm2522_vm2, 0.0, %v2605_v41  ;;  %v2616_v48 = vsel %vm2532_vm3, 0.0, %v2614_v42  ;;  %v2625_v56 = vsel %vm2542_vm4, 0.0, %v2623_v43 }
 0x1ce   : > { %v2612_v51 = vmul.f32 %v2611_v37, %v2607_v47  ;;  %v2721_v53 = vpop.f32.mrf.mxu0  ;;  %v2621_v60 = vmul.f32 %v2620_v44, %v2616_v48  ;;  %v2630_v17 = vmul.f32 %v2629_v52, %v2625_v56 }
 0x1cf   : > { %v2722_v57 = vadd.f32 %v4107_v45, %v2721_v53 }
 0x1d0   : > { %v2613_v59 = vadd.f32 %v2612_v51, %v2603_v50  ;;  %v4570_v61 = vpop.f32.mrf.mxu0  ;;  %v3344_v51 = vsub.s32 5, %v5876_v62 }
 0x1d2   : > { %v2812_v1 = vpop.f32.mrf.mxu1  ;;  %v2622_v4 = vadd.f32 %v2621_v60, %v2613_v59 }
 0x1d3   : > { %v2813_v22 = vadd.f32 %v2812_v1, %v2722_v57 }
 0x1d4   : > { %v4581_v29 = vpop.f32.mrf.mxu1  ;;  %v2631_v8 = vadd.f32 %v2630_v17, %v2622_v4  ;;  %v3370_v17 = vsub.s32 6, %v5876_v62 }
 0x1d6   : > { %v4106_v14 = vmul.f32 -1.442695, %v2631_v8 }
 0x1d8   : > { %4795 = vpow2.f32 %v4106_v14 }
 0x1d9   : > { %v2892_v16 = vpop.f32.mrf.mxu0  ;;  %4797 = vpow2.f32 %v4104_v33 }
 0x1da   : > { %v2893_v21 = vadd.f32 %v2892_v16, %v2813_v22  ;;  %4799 = vrcp.f32 %v2594_v34 }
 0x1db   : > { %v4592_v23 = vpop.f32.mrf.mxu0 }
 0x1dc   : > { %v2969_v25 = vpop.f32.mrf.mxu1 }
 0x1dd   : > { %v2970_v27 = vadd.f32 %v2969_v25, %v2893_v21 }
 0x1de   : > { %v4603_v28 = vpop.f32.mrf.mxu1 }
 0x1e2   : > { %v3052_v38 = vpop.f32.mrf.mxu0 }
 0x1e3   : > { %v3053_v32 = vadd.f32 %v3052_v38, %v2970_v27 }
 0x1e4   : > { %v4614_v35 = vpop.f32.mrf.mxu0  ;;  %v3127_v36 = vpop.f32.mrf.mxu1 }
 0x1e5   : > { %v4796_v37 = vpop.eup %4795  ;;  %v5924_v39 = vadd.f32 %v3127_v36, %v3053_v32 }
 0x1e6   : > { %v2635_v41 = vadd.f32 1.0, %v4796_v37  ;;  %v4625_v42 = vpop.f32.mrf.mxu1  ;;  %v4798_v45 = vpop.eup %4797 }
 0x1e7   : > { %v3132_v43 = vmin.f32 %v5924_v39, 20.0  ;;  %v4800_v46 = vpop.eup %4799  ;;  %v2553_v49 = vadd.f32 1.0, %v4798_v45  ;;  %vm3131_vm7 = vcmp.gt.f32.partialorder %v5924_v39, 20.0 }
 0x1e8   : > { %4801 = vrcp.f32 %v2635_v41  ;;  %v2597_v50 = vmul.f32 %v4800_v46, %v5900_v40 }
 0x1e9   : > { %v3133_v44 = vmul.f32 1.442695, %v3132_v43 }
 0x1eb   : > { %4803 = vpow2.f32 %v3133_v44 }
 0x1ec   : > { %4805 = vrcp.f32 %v2553_v49 }
 0x1f5   : > { %v4802_v47 = vpop.eup %4801 }
 0x1f6   : > { %v2638_v48 = vmul.f32 %v4802_v47, %v2631_v8 }
 0x1f8   : > { %v4804_v52 = vpop.eup %4803  ;;  %v3276_v53 = vrot.slane %v2638_v48, %v5893_v20  ;;  %v3223_v54 = vrot.slane %v2638_v48, %v5879_v2  ;;  %v3302_v55 = vrot.slane %v2638_v48, %v5882_v5  ;;  %v3250_v56 = vrot.slane %v2638_v48, %v5888_v9 }
 0x1f9   : > { %v3135_v57 = vadd.f32 1.0, %v4804_v52  ;;  %v3354_v61 = vrot.slane %v2638_v48, %v3344_v51  ;;  %v3328_v22 = vrot.slane %v2638_v48, %v3318_v58  ;;  %v3138_v29 = vmul.f32 -0.5, %v4804_v52  ;;  %v4806_v23 = vpop.eup %4805 }
 0x1fa   : > { %v3277_v59 = vmul.f32 %v3276_v53, %v2597_v50  ;;  %v3224_v60 = vmul.f32 %v3223_v54, %v2597_v50  ;;  %v3303_v40 = vmul.f32 %v3302_v55, %v2597_v50  ;;  %v3251_v4 = vmul.f32 %v3250_v56, %v2597_v50 }
 0x1fb   : > { %4807 = vlog2.f32 %v3135_v57  ;;  %v3355_v7 = vmul.f32 %v3354_v61, %v2597_v50  ;;  %v3329_v10 = vmul.f32 %v3328_v22, %v2597_v50  ;;  %v3406_v11 = vrot.slane %v2638_v48, %v3396_v63 }
 0x1fc   : > { %v3278_v1 = vsel %vm3225_vm5, %v3277_v59, 0.0  ;;  %v3226_v3 = vsel %vm3225_vm5, %v3224_v60, 0.0  ;;  %v3304_v6 = vsel %vm3225_vm5, %v3303_v40, 0.0  ;;  %v3252_v8 = vsel %vm3225_vm5, %v3251_v4, 0.0 }
 0x1fd   : > { %3279 = vadd.xlane.f32.xlu1 %v3278_v1  ;;  %3227 = vadd.xlane.f32.xlu0 %v3226_v3  ;;  %v3380_v13 = vrot.slane %v2638_v48, %v3370_v17  ;;  %v3139_v14 = vadd.f32 1.0, %v3138_v29  ;;  %v3141_v12 = vand.u32 2147483647, %v4804_v52  ;;  %v3356_v15 = vsel %vm3225_vm5, %v3355_v7, 0.0 }
 0x1fe   : > { %v3330_v16 = vsel %vm3225_vm5, %v3329_v10, 0.0  ;;  %v3407_v18 = vmul.f32 %v3406_v11, %v2597_v50  ;;  %v5954_v38 = vmul.f32 %v4806_v23, %v5921_v30 }
 0x1ff   : > { %v3381_v21 = vmul.f32 %v3380_v13, %v2597_v50  ;;  %v3140_v24 = vmul.f32 %v4804_v52, %v3139_v14  ;;  %vm3142_vm6 = vcmp.lt.f32.partialorder %v3141_v12, 0.0004427343 }
 0x200   : > { %v3408_v26 = vsel %vm3225_vm5, %v3407_v18, 0.0 }
 0x201   : > { %3305 = vadd.xlane.f32.xlu1 %v3304_v6  ;;  %3253 = vadd.xlane.f32.xlu0 %v3252_v8  ;;  %v3382_v27 = vsel %vm3225_vm5, %v3381_v21, 0.0  ;;  %vm3347_vm5 = vcmp.le.s32.totalorder %v5876_v62, 5 }
 0x205   : > { %3357 = vadd.xlane.f32.xlu1 %v3356_v15  ;;  %3331 = vadd.xlane.f32.xlu0 %v3330_v16 }
 0x208   : > { %v4808_v25 = vpop.eup %4807 }
 0x209   : > { %v3137_v28 = vmul.f32 0.6931472, %v4808_v25  ;;  %3409 = vadd.xlane.f32.xlu1 %v3408_v26  ;;  %3383 = vadd.xlane.f32.xlu0 %v3382_v27  ;;  %v4110_v27 = vmul.f32 -1.442695, %v5872_v19 }
 0x20b   : > { %v3143_v32 = vsel %vm3142_vm6, %v3140_v24, %v3137_v28  ;;  %vm3321_vm6 = vcmp.le.s32.totalorder %v5876_v62, 4 }
 0x20c   : > { %v3144_v33 = vsel %vm3131_vm7, %v5924_v39, %v3143_v32  ;;  %vm3373_vm7 = vcmp.le.s32.totalorder %v5876_v62, 6 }
 0x20d   : > { %v3152_v34 = vmul.f32 %v4108_v31, %v3144_v33  ;;  %v5958_v35 = vmul.f32 %v3144_v33, %v5954_v38 }
 0x20f   : > { %v3156_v36 = vrot.slane %v3152_v34, 1  ;;  %v3159_v37 = vrot.slane %v3152_v34, 2  ;;  %v3162_v42 = vrot.slane %v3152_v34, 3  ;;  %v3165_v44 = vrot.slane %v3152_v34, 4 }
 0x210   : > { %v3168_v47 = vrot.slane %v3152_v34, 5  ;;  %v3171_v50 = vrot.slane %v3152_v34, 6  ;;  %v3174_v54 = vrot.slane %v3152_v34, 7 }
 0x211   : > { %v3158_v41 = vadd.f32 %v3156_v36, %v3152_v34 }
 0x213   : > { %v3161_v43 = vadd.f32 %v3159_v37, %v3158_v41  ;;  %v3178_v45 = vrot.slane %v3158_v41, 7 }
 0x215   : > { %v3164_v46 = vadd.f32 %v3162_v42, %v3161_v43  ;;  %v3181_v48 = vrot.slane %v3161_v43, 6  ;;  %v3198_v30 = vsel %vm2542_vm4, %v3152_v34, %v3178_v45 }
 0x217   : > { %v3167_v49 = vadd.f32 %v3165_v44, %v3164_v46  ;;  %v3184_v52 = vrot.slane %v3164_v46, 5  ;;  %v3199_v39 = vsel %vm2532_vm3, %v3198_v30, %v3181_v48 }
 0x219   : > { %v3170_v53 = vadd.f32 %v3168_v47, %v3167_v49  ;;  %v3187_v55 = vrot.slane %v3167_v49, 4  ;;  %v3200_v56 = vsel %vm2522_vm2, %v3199_v39, %v3184_v52 }
 0x21b   : > { %v3173_v57 = vadd.f32 %v3171_v50, %v3170_v53  ;;  %v3190_v59 = vrot.slane %v3170_v53, 3  ;;  %v3202_v60 = vsel %vm3201_vm8, %v3200_v56, %v3187_v55 }
 0x21d   : > { %v3176_v40 = vadd.f32 %v3174_v54, %v3173_v57  ;;  %v3193_v61 = vrot.slane %v3173_v57, 2  ;;  %v3204_v1 = vsel %vm3203_vm9, %v3202_v60, %v3190_v59 }
 0x21f   : > { %v3196_v3 = vrot.slane %v3176_v40, 1  ;;  %v3206_v4 = vsel %vm3205_vm10, %v3204_v1, %v3193_v61 }
 0x221   : > { %v3208_v22 = vsel %vm3207_vm11, %v3206_v4, %v3196_v3 }
 0x222   : > { %v3345_v29 = vrot.slane %v3208_v22, %v3344_v51  ;;  %v3319_v6 = vrot.slane %v3208_v22, %v3318_v58  ;;  %v3397_v7 = vrot.slane %v3208_v22, %v3396_v63  ;;  %v3371_v8 = vrot.slane %v3208_v22, %v3370_v17 }
 0x223   : > { %v3267_v12 = vrot.slane %v3208_v22, %v5893_v20  ;;  %v3212_v15 = vrot.slane %v3208_v22, %v5879_v2  ;;  %v3293_v51 = vrot.slane %v3208_v22, %v5882_v5  ;;  %v3241_v18 = vrot.slane %v3208_v22, %v5888_v9 }
 0x224   : > { %v3346_v10 = vsub.f32 %v3345_v29, %v3208_v22  ;;  %v3320_v11 = vsub.f32 %v3319_v6, %v3208_v22  ;;  %v3398_v13 = vsub.f32 %v3397_v7, %v3208_v22  ;;  %v3372_v14 = vsub.f32 %v3371_v8, %v3208_v22 }
 0x225   : > { %v3268_v16 = vsub.f32 %v3267_v12, %v3208_v22  ;;  %v3213_v58 = vsub.f32 %v3212_v15, %v3208_v22  ;;  %v3294_v17 = vsub.f32 %v3293_v51, %v3208_v22  ;;  %v3242_v23 = vsub.f32 %v3241_v18, %v3208_v22 }
 0x226   : > { %v3348_v25 = vsel %vm3347_vm5, %v3346_v10, -1e+30  ;;  %v3322_v28 = vsel %vm3321_vm6, %v3320_v11, -1e+30  ;;  %v3374_v33 = vsel %vm3373_vm7, %v3372_v14, -1e+30 }
 0x227   : > { %v3270_v63 = vsel %vm3269_vm12, %v3268_v16, -1e+30  ;;  %v3217_v21 = vsel %vm3216_vm13, %v3213_v58, -1e+30  ;;  %v3296_v24 = vsel %vm3295_vm14, %v3294_v17, -1e+30 }
 0x228   : > { %v3271_v20 = vmul.f32 1.442695, %v3270_v63  ;;  %v3218_v2 = vmul.f32 1.442695, %v3217_v21  ;;  %v3244_v5 = vsel %vm3243_vm15, %v3242_v23, -1e+30 }
 0x229   : > { %v3297_v9 = vmul.f32 1.442695, %v3296_v24  ;;  %v3245_v26 = vmul.f32 1.442695, %v3244_v5  ;;  %v3349_v31 = vmul.f32 1.442695, %v3348_v25 }
 0x22a   : > { %4809 = vpow2.f32 %v3271_v20  ;;  %v3323_v32 = vmul.f32 1.442695, %v3322_v28  ;;  %v3401_v34 = vmul.f32 1.442695, %v3398_v13  ;;  %v3375_v36 = vmul.f32 1.442695, %v3374_v33 }
 0x22b   : > { %4811 = vpow2.f32 %v3218_v2 }
 0x22c   : > { %4813 = vpow2.f32 %v3297_v9 }
 0x22d   : > { %4815 = vpow2.f32 %v3245_v26 }
 0x22e   : > { %4817 = vpow2.f32 %v4110_v27 }
 0x22f   : > { %4819 = vpow2.f32 %v3349_v31 }
 0x230   : > { %4821 = vpow2.f32 %v3323_v32 }
 0x231   : > { %4823 = vpow2.f32 %v3401_v34 }
 0x232   : > { %4825 = vpow2.f32 %v3375_v36 }
 0x237   : > { %v4810_v37 = vpop.eup %4809 }
 0x238   : > { %v4812_v41 = vpop.eup %4811 }
 0x239   : > { %v4814_v46 = vpop.eup %4813 }
 0x23a   : > { %v4816_v48 = vpop.eup %4815 }
 0x23b   : > { %v4818_v50 = vpop.eup %4817 }
 0x23c   : > { %v4820_v57 = vpop.eup %4819  ;;  %v3439_v61 = vadd.f32 1.0, %v4818_v50 }
 0x23d   : > { %v4822_v40 = vpop.eup %4821 }
 0x23e   : > { %v4824_v12 = vpop.eup %4823  ;;  %4827 = vrcp.f32 %v3439_v61 }
 0x23f   : > { %v4826_v51 = vpop.eup %4825 }
 0x286   : > { %v3280_v42 = vpop.xlane.xlu1 %3279  ;;  %v3228_v43 = vpop.xlane.xlu0 %3227 }
 0x287   : > { %v3281_v44 = vmul.f32 %v4810_v37, %v3280_v42  ;;  %v3229_v45 = vmul.f32 %v4812_v41, %v3228_v43 }
 0x289   : > { %v3282_v62 = vmul.f32 %v3281_v44, %v5958_v35  ;;  %v3230_v47 = vmul.f32 %v3229_v45, %v5958_v35 }
 0x28a   : > { %v3306_v30 = vpop.xlane.xlu1 %3305  ;;  %v3254_v49 = vpop.xlane.xlu0 %3253 }
 0x28b   : > { %v3283_v52 = vsel %vm553_vm1, %v3282_v62, 0.0  ;;  %v3231_v39 = vsel %vm553_vm1, %v3230_v47, 0.0  ;;  %v3307_v53 = vmul.f32 %v4814_v46, %v3306_v30  ;;  %v3255_v54 = vmul.f32 %v4816_v48, %v3254_v49 }
 0x28c   : > { %v3284_v55 = vrot.slane %v3283_v52, 4  ;;  %v3232_v56 = vrot.slane %v3231_v39, 4 }
 0x28d   : > { %v3308_v59 = vmul.f32 %v3307_v53, %v5958_v35  ;;  %v3256_v60 = vmul.f32 %v3255_v54, %v5958_v35 }
 0x28e   : > { %v3285_v1 = vadd.f32 %v3284_v55, %v3283_v52  ;;  %v3233_v3 = vadd.f32 %v3232_v56, %v3231_v39  ;;  %v3358_v4 = vpop.xlane.xlu1 %3357  ;;  %v3332_v22 = vpop.xlane.xlu0 %3331 }
 0x28f   : > { %v3309_v29 = vsel %vm553_vm1, %v3308_v59, 0.0  ;;  %v3257_v6 = vsel %vm553_vm1, %v3256_v60, 0.0  ;;  %v3359_v7 = vmul.f32 %v4820_v57, %v3358_v4  ;;  %v3333_v8 = vmul.f32 %v4822_v40, %v3332_v22 }
 0x290   : > { %v3286_v10 = vrot.slane %v3285_v1, 2  ;;  %v3234_v11 = vrot.slane %v3233_v3, 2  ;;  %v3310_v13 = vrot.slane %v3309_v29, 4  ;;  %v3258_v14 = vrot.slane %v3257_v6, 4 }
 0x291   : > { %v3360_v15 = vmul.f32 %v3359_v7, %v5958_v35  ;;  %v3334_v16 = vmul.f32 %v3333_v8, %v5958_v35  ;;  %v4828_v7 = vpop.eup %4827 }
 0x292   : > { %v3287_v58 = vadd.f32 %v3286_v10, %v3285_v1  ;;  %v3235_v18 = vadd.f32 %v3234_v11, %v3233_v3  ;;  %v3311_v63 = vadd.f32 %v3310_v13, %v3309_v29  ;;  %v3259_v17 = vadd.f32 %v3258_v14, %v3257_v6  ;;  %v3410_v21 = vpop.xlane.xlu1 %3409  ;;  %v3384_v23 = vpop.xlane.xlu0 %3383  ;;  %v4109_v10 = vld [vmem:[%s6165_s11] ss:$0 sm:$0xff] }
 0x293   : > { %v3361_v20 = vsel %vm553_vm1, %v3360_v15, 0.0  ;;  %v3335_v2 = vsel %vm553_vm1, %v3334_v16, 0.0  ;;  %v3411_v24 = vmul.f32 %v4824_v12, %v3410_v21  ;;  %v3385_v5 = vmul.f32 %v4826_v51, %v3384_v23  ;;  %v3464_v21 = vld [vmem:[%s6167_s13 + $0x18] sm:$0xff]  ;;  %v3463_v23 = vld [vmem:[%s6167_s13 + $0x10] sm:$0xff] }
 0x294   : > { %v3312_v9 = vrot.slane %v3311_v63, 2  ;;  %v3260_v25 = vrot.slane %v3259_v17, 2  ;;  %v3362_v26 = vrot.slane %v3361_v20, 4  ;;  %v3336_v27 = vrot.slane %v3335_v2, 4 }
 0x295   : > { %v3412_v28 = vmul.f32 %v3411_v24, %v5958_v35  ;;  %v3386_v31 = vmul.f32 %v3385_v5, %v5958_v35  ;;  %v3288_v32 = vrot.slane %v3287_v58, 1  ;;  %v3236_v33 = vrot.slane %v3235_v18, 1  ;;  %v3461_v24 = vld [vmem:[%s6167_s13] sm:$0xff] }
 0x296   : > { %v3313_v34 = vadd.f32 %v3312_v9, %v3311_v63  ;;  %v3261_v36 = vadd.f32 %v3260_v25, %v3259_v17  ;;  %v3363_v37 = vadd.f32 %v3362_v26, %v3361_v20  ;;  %v3337_v41 = vadd.f32 %v3336_v27, %v3335_v2 }
 0x297   : > { %v3413_v42 = vsel %vm553_vm1, %v3412_v28, 0.0  ;;  %v3387_v43 = vsel %vm553_vm1, %v3386_v31, 0.0  ;;  %v3237_v30 = vadd.f32 %v3236_v33, %v3235_v18  ;;  %v3289_v52 = vadd.f32 %v3288_v32, %v3287_v58 }
 0x298   : > { %v3314_v44 = vrot.slane %v3313_v34, 1  ;;  %v3262_v45 = vrot.slane %v3261_v36, 1  ;;  %v3414_v46 = vrot.slane %v3413_v42, 4  ;;  %v3388_v62 = vrot.slane %v3387_v43, 4 }
 0x299   : > { %v3364_v47 = vrot.slane %v3363_v37, 2  ;;  %v3338_v48 = vrot.slane %v3337_v41, 2  ;;  %v3434_v15 = vmul.f32 %v4109_v10, %v5954_v38  ;;  %v3442_v51 = vmul.f32 %v4828_v7, %v5872_v19  ;;  %v3462_v38 = vld [vmem:[%s6167_s13 + $0x8] sm:$0xff] }
 0x29a   : > { %v3263_v49 = vadd.f32 %v3262_v45, %v3261_v36  ;;  %v3415_v50 = vadd.f32 %v3414_v46, %v3413_v42  ;;  %v3389_v35 = vadd.f32 %v3388_v62, %v3387_v43  ;;  %v3315_v54 = vadd.f32 %v3314_v44, %v3313_v34 }
 0x29b   : > { %v3365_v39 = vadd.f32 %v3364_v47, %v3363_v37  ;;  %v3339_v53 = vadd.f32 %v3338_v48, %v3337_v41  ;;  %v3493_v20 = vand.u32 4294901760, %v3464_v21  ;;  %v6025_v19 = vand.u32 4294901760, %v3463_v23 }
 0x29c   : > { %v3420_v55 = vsel %vm2542_vm4, %v3237_v30, %v3263_v49  ;;  %v3416_v56 = vrot.slane %v3415_v50, 2  ;;  %v3390_v57 = vrot.slane %v3389_v35, 2  ;;  %v6027_v2 = vand.u32 4294901760, %v3462_v38  ;;  %v4111_v30 = vld [vmem:[%s6205_s17] ss:$0 sm:$0xff] }
 0x29d   : > { %v3421_v59 = vsel %vm2532_vm3, %v3420_v55, %v3289_v52  ;;  %v3366_v60 = vrot.slane %v3365_v39, 1  ;;  %v3340_v40 = vrot.slane %v3339_v53, 1  ;;  %v6032_v5 = vand.u32 4294901760, %v3461_v24  ;;  %4627 = vmatpush3.msra.mxu0 %v3493_v20 }
 0x29e   : > { %v3422_v61 = vsel %vm2522_vm2, %v3421_v59, %v3315_v54  ;;  %v3417_v1 = vadd.f32 %v3416_v56, %v3415_v50  ;;  %v3391_v3 = vadd.f32 %v3390_v57, %v3389_v35  ;;  %v6034_v9 = vsub.f32 %v3464_v21, %v3493_v20  ;;  %4628 = vmatprep.subr.mxu0 %v5075_v0 }
 0x29f   : > { %v3367_v4 = vadd.f32 %v3366_v60, %v3365_v39  ;;  %v3341_v22 = vadd.f32 %v3340_v40, %v3339_v53  ;;  %v6037_v25 = vsub.f32 %v3463_v23, %v6025_v19  ;;  %v6040_v26 = vsub.f32 %v3462_v38, %v6027_v2  ;;  %4629 = vmatpush3.msra.mxu0 %v6025_v19 }
 0x2a0   : > { %v3418_v29 = vrot.slane %v3417_v1, 1  ;;  %v3392_v6 = vrot.slane %v3391_v3, 1  ;;  %v6043_v27 = vsub.f32 %v3461_v24, %v6032_v5  ;;  %v3574_v28 = vand.u32 4294901760, %v6034_v9  ;;  %4630 = vmatprep.subr.mxu0 %v5075_v0 }
 0x2a1   : > { %v3423_v8 = vsel %vm3201_vm8, %v3422_v61, %v3341_v22  ;;  %v3581_v31 = vand.u32 4294901760, %v6037_v25  ;;  %v3588_v32 = vand.u32 4294901760, %v6040_v26  ;;  %4631 = vmatpush3.msra.mxu0 %v6027_v2 }
 0x2a2   : > { %v3419_v11 = vadd.f32 %v3418_v29, %v3417_v1  ;;  %v3393_v13 = vadd.f32 %v3392_v6, %v3391_v3  ;;  %v3424_v14 = vsel %vm3203_vm9, %v3423_v8, %v3367_v4  ;;  %v3595_v33 = vand.u32 4294901760, %v6043_v27  ;;  %4632 = vmatprep.subr.mxu0 %v5075_v0 }
 0x2a3   : > { %v3575_v34 = vsub.f32 %v6034_v9, %v3574_v28  ;;  %v3582_v36 = vsub.f32 %v6037_v25, %v3581_v31  ;;  %v3589_v37 = vsub.f32 %v6040_v26, %v3588_v32  ;;  %4633 = vmatpush3.msra.mxu0 %v6032_v5 }
 0x2a4   : > { %v3425_v12 = vsel %vm3205_vm10, %v3424_v14, %v3393_v13  ;;  %v3596_v43 = vsub.f32 %v6043_v27, %v3595_v33  ;;  %4648 = vmatprep.subr.mxu0 %v5075_v0 }
 0x2a5   : > { %v3426_v16 = vsel %vm3207_vm11, %v3425_v12, %v3419_v11  ;;  %v3576_v41 = vand.u32 4294901760, %v3575_v34  ;;  %v3583_v42 = vand.u32 4294901760, %v3582_v36  ;;  %v3590_v44 = vand.u32 4294901760, %v3589_v37 }
 0x2a6   : > { %v3435_v58 = vadd.f32 %v3434_v15, %v3426_v16  ;;  %v3597_v45 = vand.u32 4294901760, %v3596_v43 }
 0x2a7   : > { %4638 = vmatpush3.msra.mxu1 %v3576_v41 }
 0x2a8   : > { %v3443_v18 = vmul.f32 %v3442_v51, %v3435_v58  ;;  %4639 = vmatprep.subr.mxu1 %v5075_v0 }
 0x2a9   : > { %4640 = vmatpush3.msra.mxu1 %v3583_v42 }
 0x2aa   : > { %v3444_v63 = vmul.f32 %v3443_v18, %v3443_v18  ;;  %4641 = vmatprep.subr.mxu1 %v5075_v0 }
 0x2ab   : > { %4642 = vmatpush3.msra.mxu1 %v3590_v44 }
 0x2ac   : > { %v3445_v17 = vsel %vm553_vm1, %v3444_v63, 0.0  ;;  %4643 = vmatprep.subr.mxu1 %v5075_v0 }
 0x2ad   : > { %3446 = vadd.xlane.f32.xlu0 %v3445_v17  ;;  %4644 = vmatpush3.msra.mxu1 %v3597_v45 }
 0x2ae   : > { %4659 = vmatprep.subr.mxu1 %v5075_v0 }
 0x336   : > { %v3447_v46 = vpop.xlane.xlu0 %3446 }
 0x337   : > { %v3449_v62 = vmul.f32 0.03125, %v3447_v46 }
 0x339   : > { %v3450_v47 = vadd.f32 1e-05, %v3449_v62 }
 0x33b   : > { %4829 = vrsqrt.f32 %v3450_v47 }
 0x348   : > { %v4830_v48 = vpop.eup %4829 }
 0x349   : > { %v3452_v49 = vmul.f32 %v4830_v48, %v3443_v18 }
 0x34b   : > { %v3460_v50 = vmul.f32 %v4111_v30, %v3452_v49 }
 0x34d   : > { %v3466_v35 = vsel %vm553_vm1, %v3460_v50, 0 }
 0x34e   : > { %v3537_v52 = vand.u32 4294901760, %v3466_v35 }
 0x350   : > { %v3538_v39 = vsub.f32 %v3466_v35, %v3537_v52  ;;  %4646 = vmatmul.mubr.f32.vlgmr.msra.gmra.mxu1 %v3537_v52 }
 0x351   : > { %4660 = vmatpush3.msra.mxu1 %v3493_v20  ;;  %4667 = vmatprep.mubr.msk.f32.mxu1 %vm5076_vm0, %v5075_v0 }
 0x352   : > { %4661 = vmatprep.subr.mxu1 %v5075_v0  ;;  %v3539_v53 = vand.u32 4294901760, %v3538_v39 }
 0x353   : > { %4662 = vmatpush3.msra.mxu1 %v6025_v19 }
 0x354   : > { %4663 = vmatprep.subr.mxu1 %v5075_v0  ;;  %v3540_v54 = vsub.f32 %v3538_v39, %v3539_v53 }
 0x355   : > { %4664 = vmatpush3.msra.mxu1 %v6027_v2 }
 0x356   : > { %4665 = vmatprep.subr.mxu1 %v5075_v0  ;;  %v3541_v55 = vand.u32 4294901760, %v3540_v54 }
 0x357   : > { %4666 = vmatpush3.msra.mxu1 %v6032_v5 }
 0x358   : > { %4668 = vmatmul.mubr.f32.vlgmr.msra.gmra.mxu1 %v3539_v53  ;;  %4681 = vmatprep.subr.mxu1 %v5075_v0 }
 0x359   : > { %4635 = vmatmul.mubr.f32.vlgmr.msra.gmra.mxu0 %v3541_v55  ;;  %4682 = vmatpush3.msra.mxu1 %v3493_v20 }
 0x35a   : > { %4649 = vmatpush3.msra.mxu0 %v6034_v9  ;;  %4683 = vmatprep.subr.mxu1 %v5075_v0 }
 0x35b   : > { %4650 = vmatprep.subr.mxu0 %v5075_v0  ;;  %4684 = vmatpush3.msra.mxu1 %v6025_v19 }
 0x35c   : > { %4651 = vmatpush3.msra.mxu0 %v6037_v25  ;;  %4685 = vmatprep.subr.mxu1 %v5075_v0 }
 0x35d   : > { %4652 = vmatprep.subr.mxu0 %v5075_v0  ;;  %4686 = vmatpush3.msra.mxu1 %v6027_v2 }
 0x35e   : > { %4653 = vmatpush3.msra.mxu0 %v6040_v26  ;;  %4687 = vmatprep.subr.mxu1 %v5075_v0 }
 0x35f   : > { %4654 = vmatprep.subr.mxu0 %v5075_v0  ;;  %4656 = vmatprep.mubr.msk.f32.mxu0 %vm5076_vm0, %v5075_v0 }
 0x360   : > { %4655 = vmatpush3.msra.mxu0 %v6043_v27  ;;  %4688 = vmatpush3.msra.mxu1 %v6032_v5 }
 0x361   : > { %4689 = vmatprep.mubr.msk.f32.mxu1 %vm5076_vm0, %v5075_v0  ;;  %4657 = vmatmul.mubr.f32.vlgmr.msra.gmra.mxu0 %v3538_v39 }
 0x362   : > { %4670 = vmatprep.subr.mxu0 %v5075_v0  ;;  %4690 = vmatmul.mubr.f32.vlgmr.msra.gmra.mxu1 %v3537_v52 }
 0x363   : > { %4671 = vmatpush3.msra.mxu0 %v3574_v28  ;;  %4678 = vmatprep.mubr.msk.f32.mxu0 %vm5076_vm0, %v5075_v0 }
 0x364   : > { %4672 = vmatprep.subr.mxu0 %v5075_v0 }
 0x365   : > { %4673 = vmatpush3.msra.mxu0 %v3581_v31 }
 0x366   : > { %4674 = vmatprep.subr.mxu0 %v5075_v0 }
 0x367   : > { %4675 = vmatpush3.msra.mxu0 %v3588_v32 }
 0x368   : > { %4676 = vmatprep.subr.mxu0 %v5075_v0 }
 0x369   : > { %4677 = vmatpush3.msra.mxu0 %v3595_v33 }
 0x36a   : > { %4679 = vmatmul.mubr.f32.vlgmr.msra.gmra.mxu0 %v3537_v52 }
 0x410   : > { %v3634_v56 = vpop.f32.mrf.mxu1 }
 0x412   : > { %v4647_v57 = vpop.f32.mrf.mxu1 }
 0x418   : > { %v3791_v59 = vpop.f32.mrf.mxu1 }
 0x419   : > { %v3543_v60 = vpop.f32.mrf.mxu0 }
 0x41a   : > { %v4669_v40 = vpop.f32.mrf.mxu1  ;;  %v3635_v4 = vadd.f32 %v3634_v56, %v3543_v60 }
 0x41b   : > { %v4636_v61 = vpop.f32.mrf.mxu0 }
 0x421   : > { %v3714_v1 = vpop.f32.mrf.mxu0 }
 0x422   : > { %v3949_v3 = vpop.f32.mrf.mxu1  ;;  %v3715_v0 = vadd.f32 %v3714_v1, %v3635_v4 }
 0x423   : > { %v4658_v22 = vpop.f32.mrf.mxu0 }
 0x424   : > { %v4691_v29 = vpop.f32.mrf.mxu1  ;;  %v3792_v6 = vadd.f32 %v3791_v59, %v3715_v0 }
 0x42a   : > { %v3874_v7 = vpop.f32.mrf.mxu0 }
 0x42b   : > { %v3875_v8 = vadd.f32 %v3874_v7, %v3792_v6 }
 0x42c   : > { %v4680_v10 = vpop.f32.mrf.mxu0 }
 0x42d   : > { %v3950_v11 = vadd.f32 %v3949_v3, %v3875_v8 }
 0x42f   : > { %3953 = vst.msk [vmem:[%s547_s14] sm:$0xff] %vm553_vm1, %v3950_v11 }
 0x430   : > { %5002 = shalt.err (!%p4999_p1)
}
 0x431   : > { %s5003_s7 = scalar_lea.hbm %s3966_s18, 128  ;;  %s5007_s27 = scalar_lea.hbm %s6206_s5, 256 }
 0x432   : > { %p5004_p3 = scmp.ne.s32.totalorder %s3966_s18, %s5003_s7  ;;  %p5008_p11 = scmp.lt.s32.totalorder %s3966_s18, %s6206_s5 }
 0x433   : > { %p5009_p9 = scmp.lt.s32.totalorder %s5007_s27, %s5003_s7 }
 0x434   : > { %p5005_p6 = pnand %p5004_p3, %p6207_p4 }
 0x435   : > { %p5010_p13 = por %p5009_p9, %p5008_p11 }
 0x436   : > { %p5006_p8 = pneg %p5005_p6 }
 0x438   : > { %p5011_p0 = pnand %p5010_p13, %p5006_p8 }
 0x43a   : > { %5014 = shalt.err (!%p5011_p0)
}
 0x43b   : > { %4714 = dma.vmem_to_hbm [thread:$0]  (%p6207_p4), %s3969_s22, 128, %s3966_s18, %s3955_s24  }
 0x43c PF: > { %s3980_s14 = sand.u32 1, %s5053_s29   ;;  %p6208_p2 = scmp.ne.s32.totalorder %s6195_s25, 0 }
 0x43d   : > { %p6209_p5 = scmp.ge.s32.totalorder %s5065_s16, 2  ;;  %s3981_s28 = scalar_lea.sflag [#allocation4], %s3980_s14 }
 0x43f   : > { %p4737_p7 = pnand %p6209_p5, %p6208_p2 }
 0x441   : > { %p4738_p10 = pneg %p4737_p7 }
 0x443   : > { %5048 = dma.done.wait (%p4738_p10), %s3981_s28, 128  }
 0x444   : > { %5050 = vsyncadd (%p4738_p10), %s3981_s28, 4294967168  ;;  %s6210_s12 = sld [smem:[#allocation19_spill]]  ;;  %p30_p12 = scmp.ge.s32.totalorder %s5242_s23, 4  }
 0x445   : > { %s6211_s15 = sld [smem:[#allocation20_spill]]  ;;  %s6212_s29 = smov %s5057_s30 }
 0x446   : > { %s6214_s16 = smov %s5242_s23  ;;  %32 = sbr.rel (!%p30_p12) target bundleno = 16 (0x10), region = 141 }
 0x44a   : > { %s6213_s30 = smov %s6210_s12 }
 0x44b   :  { %3986 = vsyncpa [#allocation3], 1 }
 0x44c   :  { %3988 = vsyncpa [#allocation3 + $0x1], 1 }
 0x44d   :  { %3989 = vsyncpa [#allocation6], 1 }
 0x44e   :  { %3990 = vsyncpa [#allocation9], 1 }
 0x44f   :  { %3991 = vsyncpa [#allocation12], 1 }
 0x450   :  { %3992 = vsyncpa [#allocation4], 1 }
 0x451   :  { %3994 = vsyncpa [#allocation4 + $0x1], 1 }

</bundles_post_ra>
